<compile_context>
chip_gen: v7x
topology: tpu7x:2x2x1
jax: 0.10.0
libtpu: 0.0.40
codegen_flags: <defaults>
</compile_context>

<pallas_src>
import math

import jax
import jax.numpy as jnp
import numpy as np
from jax import lax
from jax.experimental import pallas as pl
from jax.experimental.pallas import tpu as pltpu

# ---- problem sizes (small, consistent with the module's forward) -------------
B, S, E = 2, 8, 32          # batch, seq_len, embed_size
H = 4                       # num_heads
DH = E // H                 # head dim
FF_HIDDEN = 64              # ff_hidden_layers = [64]
LN_EPS = 1e-5
BN_EPS = 1e-5
SCALE = 1.0 / math.sqrt(DH)


# =============================== fused kernel =================================

def _add_ln(x, y, g, b):
    """LayerNorm(x + y) over the embedding axis (biased variance, PyTorch LN)."""
    z = x + y
    mean = jnp.mean(z, axis=-1, keepdims=True)
    var = jnp.mean((z - mean) ** 2, axis=-1, keepdims=True)
    return (z - mean) * lax.rsqrt(var + LN_EPS) * g + b


def decoder_layer_kernel(
    x_ref, mem_ref, mask_ref,
    wqkv1_ref, bqkv1_ref, wo1_ref,       # self-attention (head-stacked, packed)
    wqkv2_ref, bqkv2_ref, wo2_ref,       # cross-attention
    w1_ref, w2_ref,                      # FFN weights (pre-transposed)
    vecE_ref,                            # (7,1,E): ln1_g, ln1_b, ln2_g, ln2_b, bo1, bo2, b2
    vecF_ref,                            # (3,1,FF): b1, bn_scale, bn_shift
    out_ref,
):
    x = x_ref[0]          # (S, E)
    mem = mem_ref[0]      # (S, E)
    # additive mask computed ONCE, shared by both attentions
    amask = jnp.where(mask_ref[0] > 0, 0.0, -1e9).astype(jnp.float32)   # (S, S)

    ln1_g, ln1_b = vecE_ref[0], vecE_ref[1]
    ln2_g, ln2_b = vecE_ref[2], vecE_ref[3]
    bo1, bo2, b2 = vecE_ref[4], vecE_ref[5], vecE_ref[6]
    b1, bn_scale, bn_shift = vecF_ref[0], vecF_ref[1], vecF_ref[2]

    def mha(xq, xkv, wqkv, bqkv, wo, bo):
        # wqkv: (3H, E, DH), bqkv: (3H, 1, DH), wo: (H, DH, E) -> static leading-dim
        # indexing only, no lane slicing, no in-kernel transposes.
        out = bo                                             # (1, E), broadcasts up
        for h in range(H):                                   # static unroll, H = 4
            q = jnp.dot(xq, wqkv[h], preferred_element_type=jnp.float32) + bqkv[h]
            k = jnp.dot(xkv, wqkv[H + h], preferred_element_type=jnp.float32) + bqkv[H + h]
            v = jnp.dot(xkv, wqkv[2 * H + h], preferred_element_type=jnp.float32) + bqkv[2 * H + h]
            # q @ k^T via dot_general contracting dims (no materialized transpose)
            s = lax.dot_general(q, k, (((1,), (1,)), ((), ())),
                                preferred_element_type=jnp.float32) * SCALE + amask
            s = s - jnp.max(s, axis=-1, keepdims=True)
            p = jnp.exp(s)
            p = p * pl.reciprocal(jnp.sum(p, axis=-1, keepdims=True), approx=True)
            ctx = jnp.dot(p, v, preferred_element_type=jnp.float32)        # (S, DH)
            # full-width partial of ctx_full @ Wo.T (sum over heads == concat form)
            out = out + jnp.dot(ctx, wo[h], preferred_element_type=jnp.float32)
        return out                                           # (S, E)

    # attention1(x, x, x, mask); x = norm1(x + attn1); dropout -> identity
    a1 = mha(x, x, wqkv1_ref, bqkv1_ref, wo1_ref, bo1)
    x1 = _add_ln(x, a1, ln1_g, ln1_b)
    # attention2(x, memory, memory, mask); x = norm2(x + attn2)
    a2 = mha(x1, mem, wqkv2_ref, bqkv2_ref, wo2_ref, bo2)
    x2 = _add_ln(x1, a2, ln2_g, ln2_b)
    # feed_forward(x): Linear -> folded BatchNorm(eval) -> ReLU -> Linear
    h = jnp.dot(x2, w1_ref[...], preferred_element_type=jnp.float32) + b1
    h = jnp.maximum(h * bn_scale + bn_shift, 0.0)
    ff = jnp.dot(h, w2_ref[...], preferred_element_type=jnp.float32) + b2
    # x = norm2(x + ff)   (module reuses norm2)
    out_ref[0] = _add_ln(x2, ff, ln2_g, ln2_b)


# ============================== wrappers ======================================

def _rep(shape):
    """BlockSpec for a parameter replicated to every grid step."""
    nd = len(shape)
    return pl.BlockSpec(shape, lambda b, _nd=nd: (0,) * _nd)


def _act_spec():
    return pl.BlockSpec((1, S, E), lambda b: (b, 0, 0))


def _stack_in(w):
    """(E,E) PyTorch weight -> (H,E,DH) s.t. x @ out[h] == (x @ w.T)[:, h*DH:(h+1)*DH]."""
    return jnp.transpose(w.T.reshape(E, H, DH), (1, 0, 2))


def _stack_bias(b):  # (1, E) -> (H, 1, DH)
    return b.reshape(H, DH)[:, None, :]


def prepare_params(p):
    """One-time (outside the kernel) weight relayout: transposes, head stacking,
    BN fold, and packing of the many tiny tensors into a few slabs."""
    def prep_attn(a):
        wq, bq, wk, bk, wv, bv, wo, bo = a
        wqkv = jnp.concatenate([_stack_in(wq), _stack_in(wk), _stack_in(wv)], axis=0)   # (3H,E,DH)
        bqkv = jnp.concatenate([_stack_bias(bq), _stack_bias(bk), _stack_bias(bv)], axis=0)  # (3H,1,DH)
        return wqkv, bqkv, wo.T.reshape(H, DH, E), bo        # Wo stacked slices of Wo.T

    w1, b1, bng, bnb, bnm, bnv, w2, b2 = p["ffn"]
    bn_scale = bng * lax.rsqrt(bnv + BN_EPS)
    bn_shift = bnb - bnm * bn_scale

    wqkv1, bqkv1, wo1, bo1 = prep_attn(p["attn1"])
    wqkv2, bqkv2, wo2, bo2 = prep_attn(p["attn2"])

    vecE = jnp.stack([p["ln1_g"], p["ln1_b"], p["ln2_g"], p["ln2_b"], bo1, bo2, b2], axis=0)  # (7,1,E)
    vecF = jnp.stack([b1, bn_scale, bn_shift], axis=0)                                        # (3,1,FF)

    return {
        "wqkv1": wqkv1, "bqkv1": bqkv1, "wo1": wo1,
        "wqkv2": wqkv2, "bqkv2": bqkv2, "wo2": wo2,
        "w1t": w1.T, "w2t": w2.T,
        "vecE": vecE, "vecF": vecF,
    }


@jax.jit
def decoder_layer_forward(x, memory, mask, prep):
    in_specs = [
        _act_spec(), _act_spec(), pl.BlockSpec((1, S, S), lambda b: (b, 0, 0)),
        _rep((3 * H, E, DH)), _rep((3 * H, 1, DH)), _rep((H, DH, E)),   # attn1
        _rep((3 * H, E, DH)), _rep((3 * H, 1, DH)), _rep((H, DH, E)),   # attn2
        _rep((E, FF_HIDDEN)), _rep((FF_HIDDEN, E)),                     # W1^T, W2^T
        _rep((7, 1, E)), _rep((3, 1, FF_HIDDEN)),                       # packed vectors
    ]
    return pl.pallas_call(
        decoder_layer_kernel,
        out_shape=jax.ShapeDtypeStruct((B, S, E), jnp.float32),
        grid=(B,),
        in_specs=in_specs,
        out_specs=_act_spec(),
        compiler_params=pltpu.CompilerParams(dimension_semantics=("parallel",)),
    )(x, memory, mask,
      prep["wqkv1"], prep["bqkv1"], prep["wo1"],
      prep["wqkv2"], prep["bqkv2"], prep["wo2"],
      prep["w1t"], prep["w2t"], prep["vecE"], prep["vecF"])


# ======================== pure-JAX reference (for checking) ==================

def _mha_ref(xq, xkv, mask, wq, bq, wk, bk, wv, bv, wo, bo):
    q = xq @ wq.T + bq
    k = xkv @ wk.T + bk
    v = xkv @ wv.T + bv
    split = lambda t: t.reshape(B, S, H, DH).transpose(0, 2, 1, 3)   # (B,H,S,DH)
    qh, kh, vh = split(q), split(k), split(v)
    s = jnp.einsum("bhqd,bhkd->bhqk", qh, kh) * SCALE
    s = jnp.where(mask[:, None, :, :] > 0, s, -1e9)
    p_ = jax.nn.softmax(s, axis=-1)
    ctx = jnp.einsum("bhqk,bhkd->bhqd", p_, vh)
    ctx = ctx.transpose(0, 2, 1, 3).reshape(B, S, E)
    return ctx @ wo.T + bo


def _add_ln_ref(x, y, g, b):
    z = x + y
    mean = jnp.mean(z, axis=-1, keepdims=True)
    var = jnp.mean((z - mean) ** 2, axis=-1, keepdims=True)
    return (z - mean) * lax.rsqrt(var + LN_EPS) * g + b


def _ffn_ref(x, w1, b1, bng, bnb, bnm, bnv, w2, b2):
    h = x @ w1.T + b1
    h = (h - bnm) * lax.rsqrt(bnv + BN_EPS) * bng + bnb
    h = jnp.maximum(h, 0.0)
    return h @ w2.T + b2


def decoder_layer_ref(x, memory, mask, p):
    a1 = _mha_ref(x, x, mask, *p["attn1"])
    x = _add_ln_ref(x, a1, p["ln1_g"], p["ln1_b"])
    a2 = _mha_ref(x, memory, mask, *p["attn2"])
    x = _add_ln_ref(x, a2, p["ln2_g"], p["ln2_b"])
    ff = _ffn_ref(x, *p["ffn"])
    x = _add_ln_ref(x, ff, p["ln2_g"], p["ln2_b"])
    return x


# ================================= main =======================================

def _init_params(key):
    ks = jax.random.split(key, 16)
    n = lambda k, shape, s: (jax.random.normal(k, shape, jnp.float32) * s)

    def attn_params(k):
        kk = jax.random.split(k, 8)
        return (
            n(kk[0], (E, E), 0.08), n(kk[1], (1, E), 0.02),   # Wq, bq
            n(kk[2], (E, E), 0.08), n(kk[3], (1, E), 0.02),   # Wk, bk
            n(kk[4], (E, E), 0.08), n(kk[5], (1, E), 0.02),   # Wv, bv
            n(kk[6], (E, E), 0.08), n(kk[7], (1, E), 0.02),   # Wo, bo
        )

    he1 = math.sqrt(2.0 / E)
    he2 = math.sqrt(2.0 / FF_HIDDEN)
    ffn_params = (
        n(ks[2], (FF_HIDDEN, E), he1), n(ks[3], (1, FF_HIDDEN), 0.02),   # W1, b1
        jnp.ones((1, FF_HIDDEN), jnp.float32),   # BN gamma
        jnp.zeros((1, FF_HIDDEN), jnp.float32),  # BN beta
        jnp.zeros((1, FF_HIDDEN), jnp.float32),  # BN running mean
        jnp.ones((1, FF_HIDDEN), jnp.float32),   # BN running var
        n(ks[4], (E, FF_HIDDEN), he2), n(ks[5], (1, E), 0.02),           # W2, b2
    )

    return {
        "attn1": attn_params(ks[0]),
        "attn2": attn_params(ks[1]),
        "ln1_g": jnp.ones((1, E), jnp.float32),
        "ln1_b": jnp.zeros((1, E), jnp.float32),
        "ln2_g": jnp.ones((1, E), jnp.float32),
        "ln2_b": jnp.zeros((1, E), jnp.float32),
        "ffn": ffn_params,
    }


if __name__ == "__main__":
    key = jax.random.PRNGKey(0)
    kx, km, kp = jax.random.split(key, 3)

    x = jax.random.normal(kx, (B, S, E), jnp.float32)
    memory = jax.random.normal(km, (B, S, E), jnp.float32)
    # causal mask, shape (B, S, S); 1 = attend, 0 = masked
    mask = jnp.broadcast_to(jnp.tril(jnp.ones((S, S), jnp.float32)), (B, S, S))

    params = _init_params(kp)
    prep = prepare_params(params)        # one-time weight relayout/packing (outside kernel)

    out = decoder_layer_forward(x, memory, mask, prep)
    out = jax.block_until_ready(out)

    ref = decoder_layer_ref(x, memory, mask, params)
    # Tolerance loosened slightly (vs 1e-4) because the in-kernel softmax uses the
    # hardware approximate reciprocal (EUP vrcp, ~1e-4 relative error).
    np.testing.assert_allclose(np.asarray(out), np.asarray(ref), rtol=2e-3, atol=2e-3)

    print("KERNEL_OK")
</pallas_src>

<mosaic_0001>
module attributes {stable_mosaic.version = 11 : i64} {
  func.func @decoder_layer_kernel(%arg0: i32, %arg1: memref<1x8x32xf32, #tpu.memory_space<vmem>>, %arg2: memref<1x8x32xf32, #tpu.memory_space<vmem>>, %arg3: memref<1x8x8xf32, #tpu.memory_space<vmem>>, %arg4: memref<12x32x8xf32, #tpu.memory_space<vmem>>, %arg5: memref<12x1x8xf32, #tpu.memory_space<vmem>>, %arg6: memref<4x8x32xf32, #tpu.memory_space<vmem>>, %arg7: memref<12x32x8xf32, #tpu.memory_space<vmem>>, %arg8: memref<12x1x8xf32, #tpu.memory_space<vmem>>, %arg9: memref<4x8x32xf32, #tpu.memory_space<vmem>>, %arg10: memref<32x64xf32, #tpu.memory_space<vmem>>, %arg11: memref<64x32xf32, #tpu.memory_space<vmem>>, %arg12: memref<7x1x32xf32, #tpu.memory_space<vmem>>, %arg13: memref<3x1x64xf32, #tpu.memory_space<vmem>>, %arg14: memref<1x8x32xf32, #tpu.memory_space<vmem>>) attributes {dimension_semantics = [#tpu.dimension_semantics<parallel>], iteration_bounds = array<i64: 2>, scalar_prefetch = 0 : i64, scratch_operands = 0 : i64, tpu.core_type = #tpu.core_type<tc>, window_params = [{transform_indices = @transform_0, window_bounds = array<i64: 1, 8, 32>}, {transform_indices = @transform_1, window_bounds = array<i64: 1, 8, 32>}, {transform_indices = @transform_2, window_bounds = array<i64: 1, 8, 8>}, {pipeline_mode = #tpu.pipeline_mode<synchronous>, transform_indices = @transform_3, window_bounds = array<i64: 12, 32, 8>}, {pipeline_mode = #tpu.pipeline_mode<synchronous>, transform_indices = @transform_4, window_bounds = array<i64: 12, 1, 8>}, {pipeline_mode = #tpu.pipeline_mode<synchronous>, transform_indices = @transform_5, window_bounds = array<i64: 4, 8, 32>}, {pipeline_mode = #tpu.pipeline_mode<synchronous>, transform_indices = @transform_6, window_bounds = array<i64: 12, 32, 8>}, {pipeline_mode = #tpu.pipeline_mode<synchronous>, transform_indices = @transform_7, window_bounds = array<i64: 12, 1, 8>}, {pipeline_mode = #tpu.pipeline_mode<synchronous>, transform_indices = @transform_8, window_bounds = array<i64: 4, 8, 32>}, {pipeline_mode = #tpu.pipeline_mode<synchronous>, transform_indices = @transform_9, window_bounds = array<i64: 32, 64>}, {pipeline_mode = #tpu.pipeline_mode<synchronous>, transform_indices = @transform_10, window_bounds = array<i64: 64, 32>}, {pipeline_mode = #tpu.pipeline_mode<synchronous>, transform_indices = @transform_11, window_bounds = array<i64: 7, 1, 32>}, {pipeline_mode = #tpu.pipeline_mode<synchronous>, transform_indices = @transform_12, window_bounds = array<i64: 3, 1, 64>}, {transform_indices = @transform_13, window_bounds = array<i64: 1, 8, 32>}]} {
    %c0 = arith.constant 0 : index
    %c0_0 = arith.constant 0 : index
    %c0_1 = arith.constant 0 : index
    %0 = vector.load %arg1[%c0, %c0_0, %c0_1] : memref<1x8x32xf32, #tpu.memory_space<vmem>>, vector<1x8x32xf32>
    %1 = vector.shape_cast %0 : vector<1x8x32xf32> to vector<8x32xf32>
    %c0_2 = arith.constant 0 : index
    %c0_3 = arith.constant 0 : index
    %c0_4 = arith.constant 0 : index
    %2 = vector.load %arg2[%c0_2, %c0_3, %c0_4] : memref<1x8x32xf32, #tpu.memory_space<vmem>>, vector<1x8x32xf32>
    %3 = vector.shape_cast %2 : vector<1x8x32xf32> to vector<8x32xf32>
    %c0_5 = arith.constant 0 : index
    %c0_6 = arith.constant 0 : index
    %c0_7 = arith.constant 0 : index
    %4 = vector.load %arg3[%c0_5, %c0_6, %c0_7] : memref<1x8x8xf32, #tpu.memory_space<vmem>>, vector<1x8x8xf32>
    %5 = vector.shape_cast %4 : vector<1x8x8xf32> to vector<8x8xf32>
    %cst = arith.constant 0.000000e+00 : f32
    %6 = vector.broadcast %cst : f32 to vector<8x8xf32>
    %7 = arith.cmpf ogt, %5, %6 : vector<8x8xf32>
    %cst_8 = arith.constant 0.000000e+00 : f32
    %cst_9 = arith.constant -1.000000e+09 : f32
    %8 = vector.broadcast %cst_8 : f32 to vector<8x8xf32>
    %9 = vector.broadcast %cst_9 : f32 to vector<8x8xf32>
    %10 = arith.select %7, %8, %9 : vector<8x8xi1>, vector<8x8xf32>
    %c0_10 = arith.constant 0 : index
    %c0_11 = arith.constant 0 : index
    %c0_12 = arith.constant 0 : index
    %11 = vector.load %arg12[%c0_10, %c0_11, %c0_12] : memref<7x1x32xf32, #tpu.memory_space<vmem>>, vector<1x1x32xf32>
    %12 = vector.shape_cast %11 : vector<1x1x32xf32> to vector<1x32xf32>
    %c1 = arith.constant 1 : index
    %c0_13 = arith.constant 0 : index
    %c0_14 = arith.constant 0 : index
    %13 = vector.load %arg12[%c1, %c0_13, %c0_14] : memref<7x1x32xf32, #tpu.memory_space<vmem>>, vector<1x1x32xf32>
    %14 = vector.shape_cast %13 : vector<1x1x32xf32> to vector<1x32xf32>
    %c2 = arith.constant 2 : index
    %c0_15 = arith.constant 0 : index
    %c0_16 = arith.constant 0 : index
    %15 = vector.load %arg12[%c2, %c0_15, %c0_16] : memref<7x1x32xf32, #tpu.memory_space<vmem>>, vector<1x1x32xf32>
    %16 = vector.shape_cast %15 : vector<1x1x32xf32> to vector<1x32xf32>
    %c3 = arith.constant 3 : index
    %c0_17 = arith.constant 0 : index
    %c0_18 = arith.constant 0 : index
    %17 = vector.load %arg12[%c3, %c0_17, %c0_18] : memref<7x1x32xf32, #tpu.memory_space<vmem>>, vector<1x1x32xf32>
    %18 = vector.shape_cast %17 : vector<1x1x32xf32> to vector<1x32xf32>
    %c4 = arith.constant 4 : index
    %c0_19 = arith.constant 0 : index
    %c0_20 = arith.constant 0 : index
    %19 = vector.load %arg12[%c4, %c0_19, %c0_20] : memref<7x1x32xf32, #tpu.memory_space<vmem>>, vector<1x1x32xf32>
    %20 = vector.shape_cast %19 : vector<1x1x32xf32> to vector<1x32xf32>
    %c5 = arith.constant 5 : index
    %c0_21 = arith.constant 0 : index
    %c0_22 = arith.constant 0 : index
    %21 = vector.load %arg12[%c5, %c0_21, %c0_22] : memref<7x1x32xf32, #tpu.memory_space<vmem>>, vector<1x1x32xf32>
    %22 = vector.shape_cast %21 : vector<1x1x32xf32> to vector<1x32xf32>
    %c6 = arith.constant 6 : index
    %c0_23 = arith.constant 0 : index
    %c0_24 = arith.constant 0 : index
    %23 = vector.load %arg12[%c6, %c0_23, %c0_24] : memref<7x1x32xf32, #tpu.memory_space<vmem>>, vector<1x1x32xf32>
    %24 = vector.shape_cast %23 : vector<1x1x32xf32> to vector<1x32xf32>
    %c0_25 = arith.constant 0 : index
    %c0_26 = arith.constant 0 : index
    %c0_27 = arith.constant 0 : index
    %25 = vector.load %arg13[%c0_25, %c0_26, %c0_27] : memref<3x1x64xf32, #tpu.memory_space<vmem>>, vector<1x1x64xf32>
    %26 = vector.shape_cast %25 : vector<1x1x64xf32> to vector<1x64xf32>
    %c1_28 = arith.constant 1 : index
    %c0_29 = arith.constant 0 : index
    %c0_30 = arith.constant 0 : index
    %27 = vector.load %arg13[%c1_28, %c0_29, %c0_30] : memref<3x1x64xf32, #tpu.memory_space<vmem>>, vector<1x1x64xf32>
    %28 = vector.shape_cast %27 : vector<1x1x64xf32> to vector<1x64xf32>
    %c2_31 = arith.constant 2 : index
    %c0_32 = arith.constant 0 : index
    %c0_33 = arith.constant 0 : index
    %29 = vector.load %arg13[%c2_31, %c0_32, %c0_33] : memref<3x1x64xf32, #tpu.memory_space<vmem>>, vector<1x1x64xf32>
    %30 = vector.shape_cast %29 : vector<1x1x64xf32> to vector<1x64xf32>
    %c0_34 = arith.constant 0 : index
    %c0_35 = arith.constant 0 : index
    %c0_36 = arith.constant 0 : index
    %31 = vector.load %arg4[%c0_34, %c0_35, %c0_36] : memref<12x32x8xf32, #tpu.memory_space<vmem>>, vector<1x32x8xf32>
    %32 = vector.shape_cast %31 : vector<1x32x8xf32> to vector<32x8xf32>
    %cst_37 = arith.constant dense<0.000000e+00> : vector<8x8xf32>
    %33 = tpu.matmul %1, %32, %cst_37 {dimension_numbers = #tpu.dot_dimension_numbers<[1], [0], [0], [1], [0, 0, 1, 1], [], []>} : vector<8x32xf32>, vector<32x8xf32>, vector<8x8xf32> -> vector<8x8xf32>
    %c0_38 = arith.constant 0 : index
    %c0_39 = arith.constant 0 : index
    %c0_40 = arith.constant 0 : index
    %34 = vector.load %arg5[%c0_38, %c0_39, %c0_40] : memref<12x1x8xf32, #tpu.memory_space<vmem>>, vector<1x1x8xf32>
    %35 = vector.shape_cast %34 : vector<1x1x8xf32> to vector<1x8xf32>
    %36 = vector.broadcast %35 : vector<1x8xf32> to vector<8x8xf32>
    %37 = arith.addf %33, %36 : vector<8x8xf32>
    %c4_41 = arith.constant 4 : index
    %c0_42 = arith.constant 0 : index
    %c0_43 = arith.constant 0 : index
    %38 = vector.load %arg4[%c4_41, %c0_42, %c0_43] : memref<12x32x8xf32, #tpu.memory_space<vmem>>, vector<1x32x8xf32>
    %39 = vector.shape_cast %38 : vector<1x32x8xf32> to vector<32x8xf32>
    %cst_44 = arith.constant dense<0.000000e+00> : vector<8x8xf32>
    %40 = tpu.matmul %1, %39, %cst_44 {dimension_numbers = #tpu.dot_dimension_numbers<[1], [0], [0], [1], [0, 0, 1, 1], [], []>} : vector<8x32xf32>, vector<32x8xf32>, vector<8x8xf32> -> vector<8x8xf32>
    %c4_45 = arith.constant 4 : index
    %c0_46 = arith.constant 0 : index
    %c0_47 = arith.constant 0 : index
    %41 = vector.load %arg5[%c4_45, %c0_46, %c0_47] : memref<12x1x8xf32, #tpu.memory_space<vmem>>, vector<1x1x8xf32>
    %42 = vector.shape_cast %41 : vector<1x1x8xf32> to vector<1x8xf32>
    %43 = vector.broadcast %42 : vector<1x8xf32> to vector<8x8xf32>
    %44 = arith.addf %40, %43 : vector<8x8xf32>
    %c8 = arith.constant 8 : index
    %c0_48 = arith.constant 0 : index
    %c0_49 = arith.constant 0 : index
    %45 = vector.load %arg4[%c8, %c0_48, %c0_49] : memref<12x32x8xf32, #tpu.memory_space<vmem>>, vector<1x32x8xf32>
    %46 = vector.shape_cast %45 : vector<1x32x8xf32> to vector<32x8xf32>
    %cst_50 = arith.constant dense<0.000000e+00> : vector<8x8xf32>
    %47 = tpu.matmul %1, %46, %cst_50 {dimension_numbers = #tpu.dot_dimension_numbers<[1], [0], [0], [1], [0, 0, 1, 1], [], []>} : vector<8x32xf32>, vector<32x8xf32>, vector<8x8xf32> -> vector<8x8xf32>
    %c8_51 = arith.constant 8 : index
    %c0_52 = arith.constant 0 : index
    %c0_53 = arith.constant 0 : index
    %48 = vector.load %arg5[%c8_51, %c0_52, %c0_53] : memref<12x1x8xf32, #tpu.memory_space<vmem>>, vector<1x1x8xf32>
    %49 = vector.shape_cast %48 : vector<1x1x8xf32> to vector<1x8xf32>
    %50 = vector.broadcast %49 : vector<1x8xf32> to vector<8x8xf32>
    %51 = arith.addf %47, %50 : vector<8x8xf32>
    %cst_54 = arith.constant dense<0.000000e+00> : vector<8x8xf32>
    %52 = tpu.matmul %37, %44, %cst_54 {dimension_numbers = #tpu.dot_dimension_numbers<[1], [1], [0], [0], [0, 0, 1, 0], [], []>} : vector<8x8xf32>, vector<8x8xf32>, vector<8x8xf32> -> vector<8x8xf32>
    %cst_55 = arith.constant 0.353553385 : f32
    %53 = vector.broadcast %cst_55 : f32 to vector<8x8xf32>
    %54 = arith.mulf %52, %53 : vector<8x8xf32>
    %55 = arith.addf %54, %10 : vector<8x8xf32>
    %cst_56 = arith.constant dense<0xFF800000> : vector<8xf32>
    %56 = vector.multi_reduction <maximumf>, %55, %cst_56 [1] : vector<8x8xf32> to vector<8xf32>
    %57 = vector.shape_cast %56 : vector<8xf32> to vector<8x1xf32>
    %58 = vector.broadcast %57 : vector<8x1xf32> to vector<8x8xf32>
    %59 = arith.subf %55, %58 : vector<8x8xf32>
    %60 = math.exp %59 : vector<8x8xf32>
    %cst_57 = arith.constant dense<0.000000e+00> : vector<8xf32>
    %61 = vector.multi_reduction <add>, %60, %cst_57 [1] : vector<8x8xf32> to vector<8xf32>
    %62 = vector.shape_cast %61 : vector<8xf32> to vector<8x1xf32>
    %63 = tpu.reciprocal %62 {approx = true} : vector<8x1xf32> -> vector<8x1xf32>
    %64 = vector.broadcast %63 : vector<8x1xf32> to vector<8x8xf32>
    %65 = arith.mulf %60, %64 : vector<8x8xf32>
    %cst_58 = arith.constant dense<0.000000e+00> : vector<8x8xf32>
    %66 = tpu.matmul %65, %51, %cst_58 {dimension_numbers = #tpu.dot_dimension_numbers<[1], [0], [0], [1], [0, 0, 1, 1], [], []>} : vector<8x8xf32>, vector<8x8xf32>, vector<8x8xf32> -> vector<8x8xf32>
    %c0_59 = arith.constant 0 : index
    %c0_60 = arith.constant 0 : index
    %c0_61 = arith.constant 0 : index
    %67 = vector.load %arg6[%c0_59, %c0_60, %c0_61] : memref<4x8x32xf32, #tpu.memory_space<vmem>>, vector<1x8x32xf32>
    %68 = vector.shape_cast %67 : vector<1x8x32xf32> to vector<8x32xf32>
    %cst_62 = arith.constant dense<0.000000e+00> : vector<8x32xf32>
    %69 = tpu.matmul %66, %68, %cst_62 {dimension_numbers = #tpu.dot_dimension_numbers<[1], [0], [0], [1], [0, 0, 1, 1], [], []>} : vector<8x8xf32>, vector<8x32xf32>, vector<8x32xf32> -> vector<8x32xf32>
    %70 = vector.broadcast %20 : vector<1x32xf32> to vector<8x32xf32>
    %71 = arith.addf %70, %69 : vector<8x32xf32>
    %c1_63 = arith.constant 1 : index
    %c0_64 = arith.constant 0 : index
    %c0_65 = arith.constant 0 : index
    %72 = vector.load %arg4[%c1_63, %c0_64, %c0_65] : memref<12x32x8xf32, #tpu.memory_space<vmem>>, vector<1x32x8xf32>
    %73 = vector.shape_cast %72 : vector<1x32x8xf32> to vector<32x8xf32>
    %cst_66 = arith.constant dense<0.000000e+00> : vector<8x8xf32>
    %74 = tpu.matmul %1, %73, %cst_66 {dimension_numbers = #tpu.dot_dimension_numbers<[1], [0], [0], [1], [0, 0, 1, 1], [], []>} : vector<8x32xf32>, vector<32x8xf32>, vector<8x8xf32> -> vector<8x8xf32>
    %c1_67 = arith.constant 1 : index
    %c0_68 = arith.constant 0 : index
    %c0_69 = arith.constant 0 : index
    %75 = vector.load %arg5[%c1_67, %c0_68, %c0_69] : memref<12x1x8xf32, #tpu.memory_space<vmem>>, vector<1x1x8xf32>
    %76 = vector.shape_cast %75 : vector<1x1x8xf32> to vector<1x8xf32>
    %77 = vector.broadcast %76 : vector<1x8xf32> to vector<8x8xf32>
    %78 = arith.addf %74, %77 : vector<8x8xf32>
    %c5_70 = arith.constant 5 : index
    %c0_71 = arith.constant 0 : index
    %c0_72 = arith.constant 0 : index
    %79 = vector.load %arg4[%c5_70, %c0_71, %c0_72] : memref<12x32x8xf32, #tpu.memory_space<vmem>>, vector<1x32x8xf32>
    %80 = vector.shape_cast %79 : vector<1x32x8xf32> to vector<32x8xf32>
    %cst_73 = arith.constant dense<0.000000e+00> : vector<8x8xf32>
    %81 = tpu.matmul %1, %80, %cst_73 {dimension_numbers = #tpu.dot_dimension_numbers<[1], [0], [0], [1], [0, 0, 1, 1], [], []>} : vector<8x32xf32>, vector<32x8xf32>, vector<8x8xf32> -> vector<8x8xf32>
    %c5_74 = arith.constant 5 : index
    %c0_75 = arith.constant 0 : index
    %c0_76 = arith.constant 0 : index
    %82 = vector.load %arg5[%c5_74, %c0_75, %c0_76] : memref<12x1x8xf32, #tpu.memory_space<vmem>>, vector<1x1x8xf32>
    %83 = vector.shape_cast %82 : vector<1x1x8xf32> to vector<1x8xf32>
    %84 = vector.broadcast %83 : vector<1x8xf32> to vector<8x8xf32>
    %85 = arith.addf %81, %84 : vector<8x8xf32>
    %c9 = arith.constant 9 : index
    %c0_77 = arith.constant 0 : index
    %c0_78 = arith.constant 0 : index
    %86 = vector.load %arg4[%c9, %c0_77, %c0_78] : memref<12x32x8xf32, #tpu.memory_space<vmem>>, vector<1x32x8xf32>
    %87 = vector.shape_cast %86 : vector<1x32x8xf32> to vector<32x8xf32>
    %cst_79 = arith.constant dense<0.000000e+00> : vector<8x8xf32>
    %88 = tpu.matmul %1, %87, %cst_79 {dimension_numbers = #tpu.dot_dimension_numbers<[1], [0], [0], [1], [0, 0, 1, 1], [], []>} : vector<8x32xf32>, vector<32x8xf32>, vector<8x8xf32> -> vector<8x8xf32>
    %c9_80 = arith.constant 9 : index
    %c0_81 = arith.constant 0 : index
    %c0_82 = arith.constant 0 : index
    %89 = vector.load %arg5[%c9_80, %c0_81, %c0_82] : memref<12x1x8xf32, #tpu.memory_space<vmem>>, vector<1x1x8xf32>
    %90 = vector.shape_cast %89 : vector<1x1x8xf32> to vector<1x8xf32>
    %91 = vector.broadcast %90 : vector<1x8xf32> to vector<8x8xf32>
    %92 = arith.addf %88, %91 : vector<8x8xf32>
    %cst_83 = arith.constant dense<0.000000e+00> : vector<8x8xf32>
    %93 = tpu.matmul %78, %85, %cst_83 {dimension_numbers = #tpu.dot_dimension_numbers<[1], [1], [0], [0], [0, 0, 1, 0], [], []>} : vector<8x8xf32>, vector<8x8xf32>, vector<8x8xf32> -> vector<8x8xf32>
    %cst_84 = arith.constant 0.353553385 : f32
    %94 = vector.broadcast %cst_84 : f32 to vector<8x8xf32>
    %95 = arith.mulf %93, %94 : vector<8x8xf32>
    %96 = arith.addf %95, %10 : vector<8x8xf32>
    %cst_85 = arith.constant dense<0xFF800000> : vector<8xf32>
    %97 = vector.multi_reduction <maximumf>, %96, %cst_85 [1] : vector<8x8xf32> to vector<8xf32>
    %98 = vector.shape_cast %97 : vector<8xf32> to vector<8x1xf32>
    %99 = vector.broadcast %98 : vector<8x1xf32> to vector<8x8xf32>
    %100 = arith.subf %96, %99 : vector<8x8xf32>
    %101 = math.exp %100 : vector<8x8xf32>
    %cst_86 = arith.constant dense<0.000000e+00> : vector<8xf32>
    %102 = vector.multi_reduction <add>, %101, %cst_86 [1] : vector<8x8xf32> to vector<8xf32>
    %103 = vector.shape_cast %102 : vector<8xf32> to vector<8x1xf32>
    %104 = tpu.reciprocal %103 {approx = true} : vector<8x1xf32> -> vector<8x1xf32>
    %105 = vector.broadcast %104 : vector<8x1xf32> to vector<8x8xf32>
    %106 = arith.mulf %101, %105 : vector<8x8xf32>
    %cst_87 = arith.constant dense<0.000000e+00> : vector<8x8xf32>
    %107 = tpu.matmul %106, %92, %cst_87 {dimension_numbers = #tpu.dot_dimension_numbers<[1], [0], [0], [1], [0, 0, 1, 1], [], []>} : vector<8x8xf32>, vector<8x8xf32>, vector<8x8xf32> -> vector<8x8xf32>
    %c1_88 = arith.constant 1 : index
    %c0_89 = arith.constant 0 : index
    %c0_90 = arith.constant 0 : index
    %108 = vector.load %arg6[%c1_88, %c0_89, %c0_90] : memref<4x8x32xf32, #tpu.memory_space<vmem>>, vector<1x8x32xf32>
    %109 = vector.shape_cast %108 : vector<1x8x32xf32> to vector<8x32xf32>
    %cst_91 = arith.constant dense<0.000000e+00> : vector<8x32xf32>
    %110 = tpu.matmul %107, %109, %cst_91 {dimension_numbers = #tpu.dot_dimension_numbers<[1], [0], [0], [1], [0, 0, 1, 1], [], []>} : vector<8x8xf32>, vector<8x32xf32>, vector<8x32xf32> -> vector<8x32xf32>
    %111 = arith.addf %71, %110 : vector<8x32xf32>
    %c2_92 = arith.constant 2 : index
    %c0_93 = arith.constant 0 : index
    %c0_94 = arith.constant 0 : index
    %112 = vector.load %arg4[%c2_92, %c0_93, %c0_94] : memref<12x32x8xf32, #tpu.memory_space<vmem>>, vector<1x32x8xf32>
    %113 = vector.shape_cast %112 : vector<1x32x8xf32> to vector<32x8xf32>
    %cst_95 = arith.constant dense<0.000000e+00> : vector<8x8xf32>
    %114 = tpu.matmul %1, %113, %cst_95 {dimension_numbers = #tpu.dot_dimension_numbers<[1], [0], [0], [1], [0, 0, 1, 1], [], []>} : vector<8x32xf32>, vector<32x8xf32>, vector<8x8xf32> -> vector<8x8xf32>
    %c2_96 = arith.constant 2 : index
    %c0_97 = arith.constant 0 : index
    %c0_98 = arith.constant 0 : index
    %115 = vector.load %arg5[%c2_96, %c0_97, %c0_98] : memref<12x1x8xf32, #tpu.memory_space<vmem>>, vector<1x1x8xf32>
    %116 = vector.shape_cast %115 : vector<1x1x8xf32> to vector<1x8xf32>
    %117 = vector.broadcast %116 : vector<1x8xf32> to vector<8x8xf32>
    %118 = arith.addf %114, %117 : vector<8x8xf32>
    %c6_99 = arith.constant 6 : index
    %c0_100 = arith.constant 0 : index
    %c0_101 = arith.constant 0 : index
    %119 = vector.load %arg4[%c6_99, %c0_100, %c0_101] : memref<12x32x8xf32, #tpu.memory_space<vmem>>, vector<1x32x8xf32>
    %120 = vector.shape_cast %119 : vector<1x32x8xf32> to vector<32x8xf32>
    %cst_102 = arith.constant dense<0.000000e+00> : vector<8x8xf32>
    %121 = tpu.matmul %1, %120, %cst_102 {dimension_numbers = #tpu.dot_dimension_numbers<[1], [0], [0], [1], [0, 0, 1, 1], [], []>} : vector<8x32xf32>, vector<32x8xf32>, vector<8x8xf32> -> vector<8x8xf32>
    %c6_103 = arith.constant 6 : index
    %c0_104 = arith.constant 0 : index
    %c0_105 = arith.constant 0 : index
    %122 = vector.load %arg5[%c6_103, %c0_104, %c0_105] : memref<12x1x8xf32, #tpu.memory_space<vmem>>, vector<1x1x8xf32>
    %123 = vector.shape_cast %122 : vector<1x1x8xf32> to vector<1x8xf32>
    %124 = vector.broadcast %123 : vector<1x8xf32> to vector<8x8xf32>
    %125 = arith.addf %121, %124 : vector<8x8xf32>
    %c10 = arith.constant 10 : index
    %c0_106 = arith.constant 0 : index
    %c0_107 = arith.constant 0 : index
    %126 = vector.load %arg4[%c10, %c0_106, %c0_107] : memref<12x32x8xf32, #tpu.memory_space<vmem>>, vector<1x32x8xf32>
    %127 = vector.shape_cast %126 : vector<1x32x8xf32> to vector<32x8xf32>
    %cst_108 = arith.constant dense<0.000000e+00> : vector<8x8xf32>
    %128 = tpu.matmul %1, %127, %cst_108 {dimension_numbers = #tpu.dot_dimension_numbers<[1], [0], [0], [1], [0, 0, 1, 1], [], []>} : vector<8x32xf32>, vector<32x8xf32>, vector<8x8xf32> -> vector<8x8xf32>
    %c10_109 = arith.constant 10 : index
    %c0_110 = arith.constant 0 : index
    %c0_111 = arith.constant 0 : index
    %129 = vector.load %arg5[%c10_109, %c0_110, %c0_111] : memref<12x1x8xf32, #tpu.memory_space<vmem>>, vector<1x1x8xf32>
    %130 = vector.shape_cast %129 : vector<1x1x8xf32> to vector<1x8xf32>
    %131 = vector.broadcast %130 : vector<1x8xf32> to vector<8x8xf32>
    %132 = arith.addf %128, %131 : vector<8x8xf32>
    %cst_112 = arith.constant dense<0.000000e+00> : vector<8x8xf32>
    %133 = tpu.matmul %118, %125, %cst_112 {dimension_numbers = #tpu.dot_dimension_numbers<[1], [1], [0], [0], [0, 0, 1, 0], [], []>} : vector<8x8xf32>, vector<8x8xf32>, vector<8x8xf32> -> vector<8x8xf32>
    %cst_113 = arith.constant 0.353553385 : f32
    %134 = vector.broadcast %cst_113 : f32 to vector<8x8xf32>
    %135 = arith.mulf %133, %134 : vector<8x8xf32>
    %136 = arith.addf %135, %10 : vector<8x8xf32>
    %cst_114 = arith.constant dense<0xFF800000> : vector<8xf32>
    %137 = vector.multi_reduction <maximumf>, %136, %cst_114 [1] : vector<8x8xf32> to vector<8xf32>
    %138 = vector.shape_cast %137 : vector<8xf32> to vector<8x1xf32>
    %139 = vector.broadcast %138 : vector<8x1xf32> to vector<8x8xf32>
    %140 = arith.subf %136, %139 : vector<8x8xf32>
    %141 = math.exp %140 : vector<8x8xf32>
    %cst_115 = arith.constant dense<0.000000e+00> : vector<8xf32>
    %142 = vector.multi_reduction <add>, %141, %cst_115 [1] : vector<8x8xf32> to vector<8xf32>
    %143 = vector.shape_cast %142 : vector<8xf32> to vector<8x1xf32>
    %144 = tpu.reciprocal %143 {approx = true} : vector<8x1xf32> -> vector<8x1xf32>
    %145 = vector.broadcast %144 : vector<8x1xf32> to vector<8x8xf32>
    %146 = arith.mulf %141, %145 : vector<8x8xf32>
    %cst_116 = arith.constant dense<0.000000e+00> : vector<8x8xf32>
    %147 = tpu.matmul %146, %132, %cst_116 {dimension_numbers = #tpu.dot_dimension_numbers<[1], [0], [0], [1], [0, 0, 1, 1], [], []>} : vector<8x8xf32>, vector<8x8xf32>, vector<8x8xf32> -> vector<8x8xf32>
    %c2_117 = arith.constant 2 : index
    %c0_118 = arith.constant 0 : index
    %c0_119 = arith.constant 0 : index
    %148 = vector.load %arg6[%c2_117, %c0_118, %c0_119] : memref<4x8x32xf32, #tpu.memory_space<vmem>>, vector<1x8x32xf32>
    %149 = vector.shape_cast %148 : vector<1x8x32xf32> to vector<8x32xf32>
    %cst_120 = arith.constant dense<0.000000e+00> : vector<8x32xf32>
    %150 = tpu.matmul %147, %149, %cst_120 {dimension_numbers = #tpu.dot_dimension_numbers<[1], [0], [0], [1], [0, 0, 1, 1], [], []>} : vector<8x8xf32>, vector<8x32xf32>, vector<8x32xf32> -> vector<8x32xf32>
    %151 = arith.addf %111, %150 : vector<8x32xf32>
    %c3_121 = arith.constant 3 : index
    %c0_122 = arith.constant 0 : index
    %c0_123 = arith.constant 0 : index
    %152 = vector.load %arg4[%c3_121, %c0_122, %c0_123] : memref<12x32x8xf32, #tpu.memory_space<vmem>>, vector<1x32x8xf32>
    %153 = vector.shape_cast %152 : vector<1x32x8xf32> to vector<32x8xf32>
    %cst_124 = arith.constant dense<0.000000e+00> : vector<8x8xf32>
    %154 = tpu.matmul %1, %153, %cst_124 {dimension_numbers = #tpu.dot_dimension_numbers<[1], [0], [0], [1], [0, 0, 1, 1], [], []>} : vector<8x32xf32>, vector<32x8xf32>, vector<8x8xf32> -> vector<8x8xf32>
    %c3_125 = arith.constant 3 : index
    %c0_126 = arith.constant 0 : index
    %c0_127 = arith.constant 0 : index
    %155 = vector.load %arg5[%c3_125, %c0_126, %c0_127] : memref<12x1x8xf32, #tpu.memory_space<vmem>>, vector<1x1x8xf32>
    %156 = vector.shape_cast %155 : vector<1x1x8xf32> to vector<1x8xf32>
    %157 = vector.broadcast %156 : vector<1x8xf32> to vector<8x8xf32>
    %158 = arith.addf %154, %157 : vector<8x8xf32>
    %c7 = arith.constant 7 : index
    %c0_128 = arith.constant 0 : index
    %c0_129 = arith.constant 0 : index
    %159 = vector.load %arg4[%c7, %c0_128, %c0_129] : memref<12x32x8xf32, #tpu.memory_space<vmem>>, vector<1x32x8xf32>
    %160 = vector.shape_cast %159 : vector<1x32x8xf32> to vector<32x8xf32>
    %cst_130 = arith.constant dense<0.000000e+00> : vector<8x8xf32>
    %161 = tpu.matmul %1, %160, %cst_130 {dimension_numbers = #tpu.dot_dimension_numbers<[1], [0], [0], [1], [0, 0, 1, 1], [], []>} : vector<8x32xf32>, vector<32x8xf32>, vector<8x8xf32> -> vector<8x8xf32>
    %c7_131 = arith.constant 7 : index
    %c0_132 = arith.constant 0 : index
    %c0_133 = arith.constant 0 : index
    %162 = vector.load %arg5[%c7_131, %c0_132, %c0_133] : memref<12x1x8xf32, #tpu.memory_space<vmem>>, vector<1x1x8xf32>
    %163 = vector.shape_cast %162 : vector<1x1x8xf32> to vector<1x8xf32>
    %164 = vector.broadcast %163 : vector<1x8xf32> to vector<8x8xf32>
    %165 = arith.addf %161, %164 : vector<8x8xf32>
    %c11 = arith.constant 11 : index
    %c0_134 = arith.constant 0 : index
    %c0_135 = arith.constant 0 : index
    %166 = vector.load %arg4[%c11, %c0_134, %c0_135] : memref<12x32x8xf32, #tpu.memory_space<vmem>>, vector<1x32x8xf32>
    %167 = vector.shape_cast %166 : vector<1x32x8xf32> to vector<32x8xf32>
    %cst_136 = arith.constant dense<0.000000e+00> : vector<8x8xf32>
    %168 = tpu.matmul %1, %167, %cst_136 {dimension_numbers = #tpu.dot_dimension_numbers<[1], [0], [0], [1], [0, 0, 1, 1], [], []>} : vector<8x32xf32>, vector<32x8xf32>, vector<8x8xf32> -> vector<8x8xf32>
    %c11_137 = arith.constant 11 : index
    %c0_138 = arith.constant 0 : index
    %c0_139 = arith.constant 0 : index
    %169 = vector.load %arg5[%c11_137, %c0_138, %c0_139] : memref<12x1x8xf32, #tpu.memory_space<vmem>>, vector<1x1x8xf32>
    %170 = vector.shape_cast %169 : vector<1x1x8xf32> to vector<1x8xf32>
    %171 = vector.broadcast %170 : vector<1x8xf32> to vector<8x8xf32>
    %172 = arith.addf %168, %171 : vector<8x8xf32>
    %cst_140 = arith.constant dense<0.000000e+00> : vector<8x8xf32>
    %173 = tpu.matmul %158, %165, %cst_140 {dimension_numbers = #tpu.dot_dimension_numbers<[1], [1], [0], [0], [0, 0, 1, 0], [], []>} : vector<8x8xf32>, vector<8x8xf32>, vector<8x8xf32> -> vector<8x8xf32>
    %cst_141 = arith.constant 0.353553385 : f32
    %174 = vector.broadcast %cst_141 : f32 to vector<8x8xf32>
    %175 = arith.mulf %173, %174 : vector<8x8xf32>
    %176 = arith.addf %175, %10 : vector<8x8xf32>
    %cst_142 = arith.constant dense<0xFF800000> : vector<8xf32>
    %177 = vector.multi_reduction <maximumf>, %176, %cst_142 [1] : vector<8x8xf32> to vector<8xf32>
    %178 = vector.shape_cast %177 : vector<8xf32> to vector<8x1xf32>
    %179 = vector.broadcast %178 : vector<8x1xf32> to vector<8x8xf32>
    %180 = arith.subf %176, %179 : vector<8x8xf32>
    %181 = math.exp %180 : vector<8x8xf32>
    %cst_143 = arith.constant dense<0.000000e+00> : vector<8xf32>
    %182 = vector.multi_reduction <add>, %181, %cst_143 [1] : vector<8x8xf32> to vector<8xf32>
    %183 = vector.shape_cast %182 : vector<8xf32> to vector<8x1xf32>
    %184 = tpu.reciprocal %183 {approx = true} : vector<8x1xf32> -> vector<8x1xf32>
    %185 = vector.broadcast %184 : vector<8x1xf32> to vector<8x8xf32>
    %186 = arith.mulf %181, %185 : vector<8x8xf32>
    %cst_144 = arith.constant dense<0.000000e+00> : vector<8x8xf32>
    %187 = tpu.matmul %186, %172, %cst_144 {dimension_numbers = #tpu.dot_dimension_numbers<[1], [0], [0], [1], [0, 0, 1, 1], [], []>} : vector<8x8xf32>, vector<8x8xf32>, vector<8x8xf32> -> vector<8x8xf32>
    %c3_145 = arith.constant 3 : index
    %c0_146 = arith.constant 0 : index
    %c0_147 = arith.constant 0 : index
    %188 = vector.load %arg6[%c3_145, %c0_146, %c0_147] : memref<4x8x32xf32, #tpu.memory_space<vmem>>, vector<1x8x32xf32>
    %189 = vector.shape_cast %188 : vector<1x8x32xf32> to vector<8x32xf32>
    %cst_148 = arith.constant dense<0.000000e+00> : vector<8x32xf32>
    %190 = tpu.matmul %187, %189, %cst_148 {dimension_numbers = #tpu.dot_dimension_numbers<[1], [0], [0], [1], [0, 0, 1, 1], [], []>} : vector<8x8xf32>, vector<8x32xf32>, vector<8x32xf32> -> vector<8x32xf32>
    %191 = arith.addf %151, %190 : vector<8x32xf32>
    %192 = arith.addf %1, %191 : vector<8x32xf32>
    %cst_149 = arith.constant dense<0.000000e+00> : vector<8xf32>
    %193 = vector.multi_reduction <add>, %192, %cst_149 [1] : vector<8x32xf32> to vector<8xf32>
    %194 = vector.shape_cast %193 : vector<8xf32> to vector<8x1xf32>
    %cst_150 = arith.constant 3.200000e+01 : f32
    %195 = vector.broadcast %cst_150 : f32 to vector<8x1xf32>
    %196 = arith.divf %194, %195 : vector<8x1xf32>
    %197 = vector.broadcast %196 : vector<8x1xf32> to vector<8x32xf32>
    %198 = arith.subf %192, %197 : vector<8x32xf32>
    %199 = arith.mulf %198, %198 : vector<8x32xf32>
    %cst_151 = arith.constant dense<0.000000e+00> : vector<8xf32>
    %200 = vector.multi_reduction <add>, %199, %cst_151 [1] : vector<8x32xf32> to vector<8xf32>
    %201 = vector.shape_cast %200 : vector<8xf32> to vector<8x1xf32>
    %cst_152 = arith.constant 3.200000e+01 : f32
    %202 = vector.broadcast %cst_152 : f32 to vector<8x1xf32>
    %203 = arith.divf %201, %202 : vector<8x1xf32>
    %204 = vector.broadcast %196 : vector<8x1xf32> to vector<8x32xf32>
    %205 = arith.subf %192, %204 : vector<8x32xf32>
    %cst_153 = arith.constant 9.99999974E-6 : f32
    %206 = vector.broadcast %cst_153 : f32 to vector<8x1xf32>
    %207 = arith.addf %203, %206 : vector<8x1xf32>
    %208 = math.rsqrt %207 : vector<8x1xf32>
    %209 = vector.broadcast %208 : vector<8x1xf32> to vector<8x32xf32>
    %210 = arith.mulf %205, %209 : vector<8x32xf32>
    %211 = vector.broadcast %12 : vector<1x32xf32> to vector<8x32xf32>
    %212 = arith.mulf %210, %211 : vector<8x32xf32>
    %213 = vector.broadcast %14 : vector<1x32xf32> to vector<8x32xf32>
    %214 = arith.addf %212, %213 : vector<8x32xf32>
    %c0_154 = arith.constant 0 : index
    %c0_155 = arith.constant 0 : index
    %c0_156 = arith.constant 0 : index
    %215 = vector.load %arg7[%c0_154, %c0_155, %c0_156] : memref<12x32x8xf32, #tpu.memory_space<vmem>>, vector<1x32x8xf32>
    %216 = vector.shape_cast %215 : vector<1x32x8xf32> to vector<32x8xf32>
    %cst_157 = arith.constant dense<0.000000e+00> : vector<8x8xf32>
    %217 = tpu.matmul %214, %216, %cst_157 {dimension_numbers = #tpu.dot_dimension_numbers<[1], [0], [0], [1], [0, 0, 1, 1], [], []>} : vector<8x32xf32>, vector<32x8xf32>, vector<8x8xf32> -> vector<8x8xf32>
    %c0_158 = arith.constant 0 : index
    %c0_159 = arith.constant 0 : index
    %c0_160 = arith.constant 0 : index
    %218 = vector.load %arg8[%c0_158, %c0_159, %c0_160] : memref<12x1x8xf32, #tpu.memory_space<vmem>>, vector<1x1x8xf32>
    %219 = vector.shape_cast %218 : vector<1x1x8xf32> to vector<1x8xf32>
    %220 = vector.broadcast %219 : vector<1x8xf32> to vector<8x8xf32>
    %221 = arith.addf %217, %220 : vector<8x8xf32>
    %c4_161 = arith.constant 4 : index
    %c0_162 = arith.constant 0 : index
    %c0_163 = arith.constant 0 : index
    %222 = vector.load %arg7[%c4_161, %c0_162, %c0_163] : memref<12x32x8xf32, #tpu.memory_space<vmem>>, vector<1x32x8xf32>
    %223 = vector.shape_cast %222 : vector<1x32x8xf32> to vector<32x8xf32>
    %cst_164 = arith.constant dense<0.000000e+00> : vector<8x8xf32>
    %224 = tpu.matmul %3, %223, %cst_164 {dimension_numbers = #tpu.dot_dimension_numbers<[1], [0], [0], [1], [0, 0, 1, 1], [], []>} : vector<8x32xf32>, vector<32x8xf32>, vector<8x8xf32> -> vector<8x8xf32>
    %c4_165 = arith.constant 4 : index
    %c0_166 = arith.constant 0 : index
    %c0_167 = arith.constant 0 : index
    %225 = vector.load %arg8[%c4_165, %c0_166, %c0_167] : memref<12x1x8xf32, #tpu.memory_space<vmem>>, vector<1x1x8xf32>
    %226 = vector.shape_cast %225 : vector<1x1x8xf32> to vector<1x8xf32>
    %227 = vector.broadcast %226 : vector<1x8xf32> to vector<8x8xf32>
    %228 = arith.addf %224, %227 : vector<8x8xf32>
    %c8_168 = arith.constant 8 : index
    %c0_169 = arith.constant 0 : index
    %c0_170 = arith.constant 0 : index
    %229 = vector.load %arg7[%c8_168, %c0_169, %c0_170] : memref<12x32x8xf32, #tpu.memory_space<vmem>>, vector<1x32x8xf32>
    %230 = vector.shape_cast %229 : vector<1x32x8xf32> to vector<32x8xf32>
    %cst_171 = arith.constant dense<0.000000e+00> : vector<8x8xf32>
    %231 = tpu.matmul %3, %230, %cst_171 {dimension_numbers = #tpu.dot_dimension_numbers<[1], [0], [0], [1], [0, 0, 1, 1], [], []>} : vector<8x32xf32>, vector<32x8xf32>, vector<8x8xf32> -> vector<8x8xf32>
    %c8_172 = arith.constant 8 : index
    %c0_173 = arith.constant 0 : index
    %c0_174 = arith.constant 0 : index
    %232 = vector.load %arg8[%c8_172, %c0_173, %c0_174] : memref<12x1x8xf32, #tpu.memory_space<vmem>>, vector<1x1x8xf32>
    %233 = vector.shape_cast %232 : vector<1x1x8xf32> to vector<1x8xf32>
    %234 = vector.broadcast %233 : vector<1x8xf32> to vector<8x8xf32>
    %235 = arith.addf %231, %234 : vector<8x8xf32>
    %cst_175 = arith.constant dense<0.000000e+00> : vector<8x8xf32>
    %236 = tpu.matmul %221, %228, %cst_175 {dimension_numbers = #tpu.dot_dimension_numbers<[1], [1], [0], [0], [0, 0, 1, 0], [], []>} : vector<8x8xf32>, vector<8x8xf32>, vector<8x8xf32> -> vector<8x8xf32>
    %cst_176 = arith.constant 0.353553385 : f32
    %237 = vector.broadcast %cst_176 : f32 to vector<8x8xf32>
    %238 = arith.mulf %236, %237 : vector<8x8xf32>
    %239 = arith.addf %238, %10 : vector<8x8xf32>
    %cst_177 = arith.constant dense<0xFF800000> : vector<8xf32>
    %240 = vector.multi_reduction <maximumf>, %239, %cst_177 [1] : vector<8x8xf32> to vector<8xf32>
    %241 = vector.shape_cast %240 : vector<8xf32> to vector<8x1xf32>
    %242 = vector.broadcast %241 : vector<8x1xf32> to vector<8x8xf32>
    %243 = arith.subf %239, %242 : vector<8x8xf32>
    %244 = math.exp %243 : vector<8x8xf32>
    %cst_178 = arith.constant dense<0.000000e+00> : vector<8xf32>
    %245 = vector.multi_reduction <add>, %244, %cst_178 [1] : vector<8x8xf32> to vector<8xf32>
    %246 = vector.shape_cast %245 : vector<8xf32> to vector<8x1xf32>
    %247 = tpu.reciprocal %246 {approx = true} : vector<8x1xf32> -> vector<8x1xf32>
    %248 = vector.broadcast %247 : vector<8x1xf32> to vector<8x8xf32>
    %249 = arith.mulf %244, %248 : vector<8x8xf32>
    %cst_179 = arith.constant dense<0.000000e+00> : vector<8x8xf32>
    %250 = tpu.matmul %249, %235, %cst_179 {dimension_numbers = #tpu.dot_dimension_numbers<[1], [0], [0], [1], [0, 0, 1, 1], [], []>} : vector<8x8xf32>, vector<8x8xf32>, vector<8x8xf32> -> vector<8x8xf32>
    %c0_180 = arith.constant 0 : index
    %c0_181 = arith.constant 0 : index
    %c0_182 = arith.constant 0 : index
    %251 = vector.load %arg9[%c0_180, %c0_181, %c0_182] : memref<4x8x32xf32, #tpu.memory_space<vmem>>, vector<1x8x32xf32>
    %252 = vector.shape_cast %251 : vector<1x8x32xf32> to vector<8x32xf32>
    %cst_183 = arith.constant dense<0.000000e+00> : vector<8x32xf32>
    %253 = tpu.matmul %250, %252, %cst_183 {dimension_numbers = #tpu.dot_dimension_numbers<[1], [0], [0], [1], [0, 0, 1, 1], [], []>} : vector<8x8xf32>, vector<8x32xf32>, vector<8x32xf32> -> vector<8x32xf32>
    %254 = vector.broadcast %22 : vector<1x32xf32> to vector<8x32xf32>
    %255 = arith.addf %254, %253 : vector<8x32xf32>
    %c1_184 = arith.constant 1 : index
    %c0_185 = arith.constant 0 : index
    %c0_186 = arith.constant 0 : index
    %256 = vector.load %arg7[%c1_184, %c0_185, %c0_186] : memref<12x32x8xf32, #tpu.memory_space<vmem>>, vector<1x32x8xf32>
    %257 = vector.shape_cast %256 : vector<1x32x8xf32> to vector<32x8xf32>
    %cst_187 = arith.constant dense<0.000000e+00> : vector<8x8xf32>
    %258 = tpu.matmul %214, %257, %cst_187 {dimension_numbers = #tpu.dot_dimension_numbers<[1], [0], [0], [1], [0, 0, 1, 1], [], []>} : vector<8x32xf32>, vector<32x8xf32>, vector<8x8xf32> -> vector<8x8xf32>
    %c1_188 = arith.constant 1 : index
    %c0_189 = arith.constant 0 : index
    %c0_190 = arith.constant 0 : index
    %259 = vector.load %arg8[%c1_188, %c0_189, %c0_190] : memref<12x1x8xf32, #tpu.memory_space<vmem>>, vector<1x1x8xf32>
    %260 = vector.shape_cast %259 : vector<1x1x8xf32> to vector<1x8xf32>
    %261 = vector.broadcast %260 : vector<1x8xf32> to vector<8x8xf32>
    %262 = arith.addf %258, %261 : vector<8x8xf32>
    %c5_191 = arith.constant 5 : index
    %c0_192 = arith.constant 0 : index
    %c0_193 = arith.constant 0 : index
    %263 = vector.load %arg7[%c5_191, %c0_192, %c0_193] : memref<12x32x8xf32, #tpu.memory_space<vmem>>, vector<1x32x8xf32>
    %264 = vector.shape_cast %263 : vector<1x32x8xf32> to vector<32x8xf32>
    %cst_194 = arith.constant dense<0.000000e+00> : vector<8x8xf32>
    %265 = tpu.matmul %3, %264, %cst_194 {dimension_numbers = #tpu.dot_dimension_numbers<[1], [0], [0], [1], [0, 0, 1, 1], [], []>} : vector<8x32xf32>, vector<32x8xf32>, vector<8x8xf32> -> vector<8x8xf32>
    %c5_195 = arith.constant 5 : index
    %c0_196 = arith.constant 0 : index
    %c0_197 = arith.constant 0 : index
    %266 = vector.load %arg8[%c5_195, %c0_196, %c0_197] : memref<12x1x8xf32, #tpu.memory_space<vmem>>, vector<1x1x8xf32>
    %267 = vector.shape_cast %266 : vector<1x1x8xf32> to vector<1x8xf32>
    %268 = vector.broadcast %267 : vector<1x8xf32> to vector<8x8xf32>
    %269 = arith.addf %265, %268 : vector<8x8xf32>
    %c9_198 = arith.constant 9 : index
    %c0_199 = arith.constant 0 : index
    %c0_200 = arith.constant 0 : index
    %270 = vector.load %arg7[%c9_198, %c0_199, %c0_200] : memref<12x32x8xf32, #tpu.memory_space<vmem>>, vector<1x32x8xf32>
    %271 = vector.shape_cast %270 : vector<1x32x8xf32> to vector<32x8xf32>
    %cst_201 = arith.constant dense<0.000000e+00> : vector<8x8xf32>
    %272 = tpu.matmul %3, %271, %cst_201 {dimension_numbers = #tpu.dot_dimension_numbers<[1], [0], [0], [1], [0, 0, 1, 1], [], []>} : vector<8x32xf32>, vector<32x8xf32>, vector<8x8xf32> -> vector<8x8xf32>
    %c9_202 = arith.constant 9 : index
    %c0_203 = arith.constant 0 : index
    %c0_204 = arith.constant 0 : index
    %273 = vector.load %arg8[%c9_202, %c0_203, %c0_204] : memref<12x1x8xf32, #tpu.memory_space<vmem>>, vector<1x1x8xf32>
    %274 = vector.shape_cast %273 : vector<1x1x8xf32> to vector<1x8xf32>
    %275 = vector.broadcast %274 : vector<1x8xf32> to vector<8x8xf32>
    %276 = arith.addf %272, %275 : vector<8x8xf32>
    %cst_205 = arith.constant dense<0.000000e+00> : vector<8x8xf32>
    %277 = tpu.matmul %262, %269, %cst_205 {dimension_numbers = #tpu.dot_dimension_numbers<[1], [1], [0], [0], [0, 0, 1, 0], [], []>} : vector<8x8xf32>, vector<8x8xf32>, vector<8x8xf32> -> vector<8x8xf32>
    %cst_206 = arith.constant 0.353553385 : f32
    %278 = vector.broadcast %cst_206 : f32 to vector<8x8xf32>
    %279 = arith.mulf %277, %278 : vector<8x8xf32>
    %280 = arith.addf %279, %10 : vector<8x8xf32>
    %cst_207 = arith.constant dense<0xFF800000> : vector<8xf32>
    %281 = vector.multi_reduction <maximumf>, %280, %cst_207 [1] : vector<8x8xf32> to vector<8xf32>
    %282 = vector.shape_cast %281 : vector<8xf32> to vector<8x1xf32>
    %283 = vector.broadcast %282 : vector<8x1xf32> to vector<8x8xf32>
    %284 = arith.subf %280, %283 : vector<8x8xf32>
    %285 = math.exp %284 : vector<8x8xf32>
    %cst_208 = arith.constant dense<0.000000e+00> : vector<8xf32>
    %286 = vector.multi_reduction <add>, %285, %cst_208 [1] : vector<8x8xf32> to vector<8xf32>
    %287 = vector.shape_cast %286 : vector<8xf32> to vector<8x1xf32>
    %288 = tpu.reciprocal %287 {approx = true} : vector<8x1xf32> -> vector<8x1xf32>
    %289 = vector.broadcast %288 : vector<8x1xf32> to vector<8x8xf32>
    %290 = arith.mulf %285, %289 : vector<8x8xf32>
    %cst_209 = arith.constant dense<0.000000e+00> : vector<8x8xf32>
    %291 = tpu.matmul %290, %276, %cst_209 {dimension_numbers = #tpu.dot_dimension_numbers<[1], [0], [0], [1], [0, 0, 1, 1], [], []>} : vector<8x8xf32>, vector<8x8xf32>, vector<8x8xf32> -> vector<8x8xf32>
    %c1_210 = arith.constant 1 : index
    %c0_211 = arith.constant 0 : index
    %c0_212 = arith.constant 0 : index
    %292 = vector.load %arg9[%c1_210, %c0_211, %c0_212] : memref<4x8x32xf32, #tpu.memory_space<vmem>>, vector<1x8x32xf32>
    %293 = vector.shape_cast %292 : vector<1x8x32xf32> to vector<8x32xf32>
    %cst_213 = arith.constant dense<0.000000e+00> : vector<8x32xf32>
    %294 = tpu.matmul %291, %293, %cst_213 {dimension_numbers = #tpu.dot_dimension_numbers<[1], [0], [0], [1], [0, 0, 1, 1], [], []>} : vector<8x8xf32>, vector<8x32xf32>, vector<8x32xf32> -> vector<8x32xf32>
    %295 = arith.addf %255, %294 : vector<8x32xf32>
    %c2_214 = arith.constant 2 : index
    %c0_215 = arith.constant 0 : index
    %c0_216 = arith.constant 0 : index
    %296 = vector.load %arg7[%c2_214, %c0_215, %c0_216] : memref<12x32x8xf32, #tpu.memory_space<vmem>>, vector<1x32x8xf32>
    %297 = vector.shape_cast %296 : vector<1x32x8xf32> to vector<32x8xf32>
    %cst_217 = arith.constant dense<0.000000e+00> : vector<8x8xf32>
    %298 = tpu.matmul %214, %297, %cst_217 {dimension_numbers = #tpu.dot_dimension_numbers<[1], [0], [0], [1], [0, 0, 1, 1], [], []>} : vector<8x32xf32>, vector<32x8xf32>, vector<8x8xf32> -> vector<8x8xf32>
    %c2_218 = arith.constant 2 : index
    %c0_219 = arith.constant 0 : index
    %c0_220 = arith.constant 0 : index
    %299 = vector.load %arg8[%c2_218, %c0_219, %c0_220] : memref<12x1x8xf32, #tpu.memory_space<vmem>>, vector<1x1x8xf32>
    %300 = vector.shape_cast %299 : vector<1x1x8xf32> to vector<1x8xf32>
    %301 = vector.broadcast %300 : vector<1x8xf32> to vector<8x8xf32>
    %302 = arith.addf %298, %301 : vector<8x8xf32>
    %c6_221 = arith.constant 6 : index
    %c0_222 = arith.constant 0 : index
    %c0_223 = arith.constant 0 : index
    %303 = vector.load %arg7[%c6_221, %c0_222, %c0_223] : memref<12x32x8xf32, #tpu.memory_space<vmem>>, vector<1x32x8xf32>
    %304 = vector.shape_cast %303 : vector<1x32x8xf32> to vector<32x8xf32>
    %cst_224 = arith.constant dense<0.000000e+00> : vector<8x8xf32>
    %305 = tpu.matmul %3, %304, %cst_224 {dimension_numbers = #tpu.dot_dimension_numbers<[1], [0], [0], [1], [0, 0, 1, 1], [], []>} : vector<8x32xf32>, vector<32x8xf32>, vector<8x8xf32> -> vector<8x8xf32>
    %c6_225 = arith.constant 6 : index
    %c0_226 = arith.constant 0 : index
    %c0_227 = arith.constant 0 : index
    %306 = vector.load %arg8[%c6_225, %c0_226, %c0_227] : memref<12x1x8xf32, #tpu.memory_space<vmem>>, vector<1x1x8xf32>
    %307 = vector.shape_cast %306 : vector<1x1x8xf32> to vector<1x8xf32>
    %308 = vector.broadcast %307 : vector<1x8xf32> to vector<8x8xf32>
    %309 = arith.addf %305, %308 : vector<8x8xf32>
    %c10_228 = arith.constant 10 : index
    %c0_229 = arith.constant 0 : index
    %c0_230 = arith.constant 0 : index
    %310 = vector.load %arg7[%c10_228, %c0_229, %c0_230] : memref<12x32x8xf32, #tpu.memory_space<vmem>>, vector<1x32x8xf32>
    %311 = vector.shape_cast %310 : vector<1x32x8xf32> to vector<32x8xf32>
    %cst_231 = arith.constant dense<0.000000e+00> : vector<8x8xf32>
    %312 = tpu.matmul %3, %311, %cst_231 {dimension_numbers = #tpu.dot_dimension_numbers<[1], [0], [0], [1], [0, 0, 1, 1], [], []>} : vector<8x32xf32>, vector<32x8xf32>, vector<8x8xf32> -> vector<8x8xf32>
    %c10_232 = arith.constant 10 : index
    %c0_233 = arith.constant 0 : index
    %c0_234 = arith.constant 0 : index
    %313 = vector.load %arg8[%c10_232, %c0_233, %c0_234] : memref<12x1x8xf32, #tpu.memory_space<vmem>>, vector<1x1x8xf32>
    %314 = vector.shape_cast %313 : vector<1x1x8xf32> to vector<1x8xf32>
    %315 = vector.broadcast %314 : vector<1x8xf32> to vector<8x8xf32>
    %316 = arith.addf %312, %315 : vector<8x8xf32>
    %cst_235 = arith.constant dense<0.000000e+00> : vector<8x8xf32>
    %317 = tpu.matmul %302, %309, %cst_235 {dimension_numbers = #tpu.dot_dimension_numbers<[1], [1], [0], [0], [0, 0, 1, 0], [], []>} : vector<8x8xf32>, vector<8x8xf32>, vector<8x8xf32> -> vector<8x8xf32>
    %cst_236 = arith.constant 0.353553385 : f32
    %318 = vector.broadcast %cst_236 : f32 to vector<8x8xf32>
    %319 = arith.mulf %317, %318 : vector<8x8xf32>
    %320 = arith.addf %319, %10 : vector<8x8xf32>
    %cst_237 = arith.constant dense<0xFF800000> : vector<8xf32>
    %321 = vector.multi_reduction <maximumf>, %320, %cst_237 [1] : vector<8x8xf32> to vector<8xf32>
    %322 = vector.shape_cast %321 : vector<8xf32> to vector<8x1xf32>
    %323 = vector.broadcast %322 : vector<8x1xf32> to vector<8x8xf32>
    %324 = arith.subf %320, %323 : vector<8x8xf32>
    %325 = math.exp %324 : vector<8x8xf32>
    %cst_238 = arith.constant dense<0.000000e+00> : vector<8xf32>
    %326 = vector.multi_reduction <add>, %325, %cst_238 [1] : vector<8x8xf32> to vector<8xf32>
    %327 = vector.shape_cast %326 : vector<8xf32> to vector<8x1xf32>
    %328 = tpu.reciprocal %327 {approx = true} : vector<8x1xf32> -> vector<8x1xf32>
    %329 = vector.broadcast %328 : vector<8x1xf32> to vector<8x8xf32>
    %330 = arith.mulf %325, %329 : vector<8x8xf32>
    %cst_239 = arith.constant dense<0.000000e+00> : vector<8x8xf32>
    %331 = tpu.matmul %330, %316, %cst_239 {dimension_numbers = #tpu.dot_dimension_numbers<[1], [0], [0], [1], [0, 0, 1, 1], [], []>} : vector<8x8xf32>, vector<8x8xf32>, vector<8x8xf32> -> vector<8x8xf32>
    %c2_240 = arith.constant 2 : index
    %c0_241 = arith.constant 0 : index
    %c0_242 = arith.constant 0 : index
    %332 = vector.load %arg9[%c2_240, %c0_241, %c0_242] : memref<4x8x32xf32, #tpu.memory_space<vmem>>, vector<1x8x32xf32>
    %333 = vector.shape_cast %332 : vector<1x8x32xf32> to vector<8x32xf32>
    %cst_243 = arith.constant dense<0.000000e+00> : vector<8x32xf32>
    %334 = tpu.matmul %331, %333, %cst_243 {dimension_numbers = #tpu.dot_dimension_numbers<[1], [0], [0], [1], [0, 0, 1, 1], [], []>} : vector<8x8xf32>, vector<8x32xf32>, vector<8x32xf32> -> vector<8x32xf32>
    %335 = arith.addf %295, %334 : vector<8x32xf32>
    %c3_244 = arith.constant 3 : index
    %c0_245 = arith.constant 0 : index
    %c0_246 = arith.constant 0 : index
    %336 = vector.load %arg7[%c3_244, %c0_245, %c0_246] : memref<12x32x8xf32, #tpu.memory_space<vmem>>, vector<1x32x8xf32>
    %337 = vector.shape_cast %336 : vector<1x32x8xf32> to vector<32x8xf32>
    %cst_247 = arith.constant dense<0.000000e+00> : vector<8x8xf32>
    %338 = tpu.matmul %214, %337, %cst_247 {dimension_numbers = #tpu.dot_dimension_numbers<[1], [0], [0], [1], [0, 0, 1, 1], [], []>} : vector<8x32xf32>, vector<32x8xf32>, vector<8x8xf32> -> vector<8x8xf32>
    %c3_248 = arith.constant 3 : index
    %c0_249 = arith.constant 0 : index
    %c0_250 = arith.constant 0 : index
    %339 = vector.load %arg8[%c3_248, %c0_249, %c0_250] : memref<12x1x8xf32, #tpu.memory_space<vmem>>, vector<1x1x8xf32>
    %340 = vector.shape_cast %339 : vector<1x1x8xf32> to vector<1x8xf32>
    %341 = vector.broadcast %340 : vector<1x8xf32> to vector<8x8xf32>
    %342 = arith.addf %338, %341 : vector<8x8xf32>
    %c7_251 = arith.constant 7 : index
    %c0_252 = arith.constant 0 : index
    %c0_253 = arith.constant 0 : index
    %343 = vector.load %arg7[%c7_251, %c0_252, %c0_253] : memref<12x32x8xf32, #tpu.memory_space<vmem>>, vector<1x32x8xf32>
    %344 = vector.shape_cast %343 : vector<1x32x8xf32> to vector<32x8xf32>
    %cst_254 = arith.constant dense<0.000000e+00> : vector<8x8xf32>
    %345 = tpu.matmul %3, %344, %cst_254 {dimension_numbers = #tpu.dot_dimension_numbers<[1], [0], [0], [1], [0, 0, 1, 1], [], []>} : vector<8x32xf32>, vector<32x8xf32>, vector<8x8xf32> -> vector<8x8xf32>
    %c7_255 = arith.constant 7 : index
    %c0_256 = arith.constant 0 : index
    %c0_257 = arith.constant 0 : index
    %346 = vector.load %arg8[%c7_255, %c0_256, %c0_257] : memref<12x1x8xf32, #tpu.memory_space<vmem>>, vector<1x1x8xf32>
    %347 = vector.shape_cast %346 : vector<1x1x8xf32> to vector<1x8xf32>
    %348 = vector.broadcast %347 : vector<1x8xf32> to vector<8x8xf32>
    %349 = arith.addf %345, %348 : vector<8x8xf32>
    %c11_258 = arith.constant 11 : index
    %c0_259 = arith.constant 0 : index
    %c0_260 = arith.constant 0 : index
    %350 = vector.load %arg7[%c11_258, %c0_259, %c0_260] : memref<12x32x8xf32, #tpu.memory_space<vmem>>, vector<1x32x8xf32>
    %351 = vector.shape_cast %350 : vector<1x32x8xf32> to vector<32x8xf32>
    %cst_261 = arith.constant dense<0.000000e+00> : vector<8x8xf32>
    %352 = tpu.matmul %3, %351, %cst_261 {dimension_numbers = #tpu.dot_dimension_numbers<[1], [0], [0], [1], [0, 0, 1, 1], [], []>} : vector<8x32xf32>, vector<32x8xf32>, vector<8x8xf32> -> vector<8x8xf32>
    %c11_262 = arith.constant 11 : index
    %c0_263 = arith.constant 0 : index
    %c0_264 = arith.constant 0 : index
    %353 = vector.load %arg8[%c11_262, %c0_263, %c0_264] : memref<12x1x8xf32, #tpu.memory_space<vmem>>, vector<1x1x8xf32>
    %354 = vector.shape_cast %353 : vector<1x1x8xf32> to vector<1x8xf32>
    %355 = vector.broadcast %354 : vector<1x8xf32> to vector<8x8xf32>
    %356 = arith.addf %352, %355 : vector<8x8xf32>
    %cst_265 = arith.constant dense<0.000000e+00> : vector<8x8xf32>
    %357 = tpu.matmul %342, %349, %cst_265 {dimension_numbers = #tpu.dot_dimension_numbers<[1], [1], [0], [0], [0, 0, 1, 0], [], []>} : vector<8x8xf32>, vector<8x8xf32>, vector<8x8xf32> -> vector<8x8xf32>
    %cst_266 = arith.constant 0.353553385 : f32
    %358 = vector.broadcast %cst_266 : f32 to vector<8x8xf32>
    %359 = arith.mulf %357, %358 : vector<8x8xf32>
    %360 = arith.addf %359, %10 : vector<8x8xf32>
    %cst_267 = arith.constant dense<0xFF800000> : vector<8xf32>
    %361 = vector.multi_reduction <maximumf>, %360, %cst_267 [1] : vector<8x8xf32> to vector<8xf32>
    %362 = vector.shape_cast %361 : vector<8xf32> to vector<8x1xf32>
    %363 = vector.broadcast %362 : vector<8x1xf32> to vector<8x8xf32>
    %364 = arith.subf %360, %363 : vector<8x8xf32>
    %365 = math.exp %364 : vector<8x8xf32>
    %cst_268 = arith.constant dense<0.000000e+00> : vector<8xf32>
    %366 = vector.multi_reduction <add>, %365, %cst_268 [1] : vector<8x8xf32> to vector<8xf32>
    %367 = vector.shape_cast %366 : vector<8xf32> to vector<8x1xf32>
    %368 = tpu.reciprocal %367 {approx = true} : vector<8x1xf32> -> vector<8x1xf32>
    %369 = vector.broadcast %368 : vector<8x1xf32> to vector<8x8xf32>
    %370 = arith.mulf %365, %369 : vector<8x8xf32>
    %cst_269 = arith.constant dense<0.000000e+00> : vector<8x8xf32>
    %371 = tpu.matmul %370, %356, %cst_269 {dimension_numbers = #tpu.dot_dimension_numbers<[1], [0], [0], [1], [0, 0, 1, 1], [], []>} : vector<8x8xf32>, vector<8x8xf32>, vector<8x8xf32> -> vector<8x8xf32>
    %c3_270 = arith.constant 3 : index
    %c0_271 = arith.constant 0 : index
    %c0_272 = arith.constant 0 : index
    %372 = vector.load %arg9[%c3_270, %c0_271, %c0_272] : memref<4x8x32xf32, #tpu.memory_space<vmem>>, vector<1x8x32xf32>
    %373 = vector.shape_cast %372 : vector<1x8x32xf32> to vector<8x32xf32>
    %cst_273 = arith.constant dense<0.000000e+00> : vector<8x32xf32>
    %374 = tpu.matmul %371, %373, %cst_273 {dimension_numbers = #tpu.dot_dimension_numbers<[1], [0], [0], [1], [0, 0, 1, 1], [], []>} : vector<8x8xf32>, vector<8x32xf32>, vector<8x32xf32> -> vector<8x32xf32>
    %375 = arith.addf %335, %374 : vector<8x32xf32>
    %376 = arith.addf %214, %375 : vector<8x32xf32>
    %cst_274 = arith.constant dense<0.000000e+00> : vector<8xf32>
    %377 = vector.multi_reduction <add>, %376, %cst_274 [1] : vector<8x32xf32> to vector<8xf32>
    %378 = vector.shape_cast %377 : vector<8xf32> to vector<8x1xf32>
    %cst_275 = arith.constant 3.200000e+01 : f32
    %379 = vector.broadcast %cst_275 : f32 to vector<8x1xf32>
    %380 = arith.divf %378, %379 : vector<8x1xf32>
    %381 = vector.broadcast %380 : vector<8x1xf32> to vector<8x32xf32>
    %382 = arith.subf %376, %381 : vector<8x32xf32>
    %383 = arith.mulf %382, %382 : vector<8x32xf32>
    %cst_276 = arith.constant dense<0.000000e+00> : vector<8xf32>
    %384 = vector.multi_reduction <add>, %383, %cst_276 [1] : vector<8x32xf32> to vector<8xf32>
    %385 = vector.shape_cast %384 : vector<8xf32> to vector<8x1xf32>
    %cst_277 = arith.constant 3.200000e+01 : f32
    %386 = vector.broadcast %cst_277 : f32 to vector<8x1xf32>
    %387 = arith.divf %385, %386 : vector<8x1xf32>
    %388 = vector.broadcast %380 : vector<8x1xf32> to vector<8x32xf32>
    %389 = arith.subf %376, %388 : vector<8x32xf32>
    %cst_278 = arith.constant 9.99999974E-6 : f32
    %390 = vector.broadcast %cst_278 : f32 to vector<8x1xf32>
    %391 = arith.addf %387, %390 : vector<8x1xf32>
    %392 = math.rsqrt %391 : vector<8x1xf32>
    %393 = vector.broadcast %392 : vector<8x1xf32> to vector<8x32xf32>
    %394 = arith.mulf %389, %393 : vector<8x32xf32>
    %395 = vector.broadcast %16 : vector<1x32xf32> to vector<8x32xf32>
    %396 = arith.mulf %394, %395 : vector<8x32xf32>
    %397 = vector.broadcast %18 : vector<1x32xf32> to vector<8x32xf32>
    %398 = arith.addf %396, %397 : vector<8x32xf32>
    %c0_279 = arith.constant 0 : index
    %c0_280 = arith.constant 0 : index
    %399 = vector.load %arg10[%c0_279, %c0_280] : memref<32x64xf32, #tpu.memory_space<vmem>>, vector<32x64xf32>
    %cst_281 = arith.constant dense<0.000000e+00> : vector<8x64xf32>
    %400 = tpu.matmul %398, %399, %cst_281 {dimension_numbers = #tpu.dot_dimension_numbers<[1], [0], [0], [1], [0, 0, 1, 1], [], []>} : vector<8x32xf32>, vector<32x64xf32>, vector<8x64xf32> -> vector<8x64xf32>
    %401 = vector.broadcast %26 : vector<1x64xf32> to vector<8x64xf32>
    %402 = arith.addf %400, %401 : vector<8x64xf32>
    %403 = vector.broadcast %28 : vector<1x64xf32> to vector<8x64xf32>
    %404 = arith.mulf %402, %403 : vector<8x64xf32>
    %405 = vector.broadcast %30 : vector<1x64xf32> to vector<8x64xf32>
    %406 = arith.addf %404, %405 : vector<8x64xf32>
    %cst_282 = arith.constant 0.000000e+00 : f32
    %407 = vector.broadcast %cst_282 : f32 to vector<8x64xf32>
    %408 = arith.maximumf %406, %407 : vector<8x64xf32>
    %c0_283 = arith.constant 0 : index
    %c0_284 = arith.constant 0 : index
    %409 = vector.load %arg11[%c0_283, %c0_284] : memref<64x32xf32, #tpu.memory_space<vmem>>, vector<64x32xf32>
    %cst_285 = arith.constant dense<0.000000e+00> : vector<8x32xf32>
    %410 = tpu.matmul %408, %409, %cst_285 {dimension_numbers = #tpu.dot_dimension_numbers<[1], [0], [0], [1], [0, 0, 1, 1], [], []>} : vector<8x64xf32>, vector<64x32xf32>, vector<8x32xf32> -> vector<8x32xf32>
    %411 = vector.broadcast %24 : vector<1x32xf32> to vector<8x32xf32>
    %412 = arith.addf %410, %411 : vector<8x32xf32>
    %413 = arith.addf %398, %412 : vector<8x32xf32>
    %cst_286 = arith.constant dense<0.000000e+00> : vector<8xf32>
    %414 = vector.multi_reduction <add>, %413, %cst_286 [1] : vector<8x32xf32> to vector<8xf32>
    %415 = vector.shape_cast %414 : vector<8xf32> to vector<8x1xf32>
    %cst_287 = arith.constant 3.200000e+01 : f32
    %416 = vector.broadcast %cst_287 : f32 to vector<8x1xf32>
    %417 = arith.divf %415, %416 : vector<8x1xf32>
    %418 = vector.broadcast %417 : vector<8x1xf32> to vector<8x32xf32>
    %419 = arith.subf %413, %418 : vector<8x32xf32>
    %420 = arith.mulf %419, %419 : vector<8x32xf32>
    %cst_288 = arith.constant dense<0.000000e+00> : vector<8xf32>
    %421 = vector.multi_reduction <add>, %420, %cst_288 [1] : vector<8x32xf32> to vector<8xf32>
    %422 = vector.shape_cast %421 : vector<8xf32> to vector<8x1xf32>
    %cst_289 = arith.constant 3.200000e+01 : f32
    %423 = vector.broadcast %cst_289 : f32 to vector<8x1xf32>
    %424 = arith.divf %422, %423 : vector<8x1xf32>
    %425 = vector.broadcast %417 : vector<8x1xf32> to vector<8x32xf32>
    %426 = arith.subf %413, %425 : vector<8x32xf32>
    %cst_290 = arith.constant 9.99999974E-6 : f32
    %427 = vector.broadcast %cst_290 : f32 to vector<8x1xf32>
    %428 = arith.addf %424, %427 : vector<8x1xf32>
    %429 = math.rsqrt %428 : vector<8x1xf32>
    %430 = vector.broadcast %429 : vector<8x1xf32> to vector<8x32xf32>
    %431 = arith.mulf %426, %430 : vector<8x32xf32>
    %432 = vector.broadcast %16 : vector<1x32xf32> to vector<8x32xf32>
    %433 = arith.mulf %431, %432 : vector<8x32xf32>
    %434 = vector.broadcast %18 : vector<1x32xf32> to vector<8x32xf32>
    %435 = arith.addf %433, %434 : vector<8x32xf32>
    %c0_291 = arith.constant 0 : index
    %c0_292 = arith.constant 0 : index
    %c0_293 = arith.constant 0 : index
    %436 = vector.load %arg14[%c0_291, %c0_292, %c0_293] : memref<1x8x32xf32, #tpu.memory_space<vmem>>, vector<1x8x32xf32>
    %437 = vector.shape_cast %436 : vector<1x8x32xf32> to vector<8x32xf32>
    %438 = vector.shape_cast %435 : vector<8x32xf32> to vector<1x8x32xf32>
    tpu.vector_store %arg14[%c0_291, %c0_292, %c0_293], %438 {strides = array<i32>} : memref<1x8x32xf32, #tpu.memory_space<vmem>>, vector<1x8x32xf32>,
    return
  }
  func.func @transform_0(%arg0: i32) -> (i32, i32, i32) {
    %c0_i32 = arith.constant 0 : i32
    %c0_i32_0 = arith.constant 0 : i32
    %c0_i32_1 = arith.constant 0 : i32
    return %arg0, %c0_i32, %c0_i32_0 : i32, i32, i32
  }
  func.func @transform_1(%arg0: i32) -> (i32, i32, i32) {
    %c0_i32 = arith.constant 0 : i32
    %c0_i32_0 = arith.constant 0 : i32
    %c0_i32_1 = arith.constant 0 : i32
    return %arg0, %c0_i32, %c0_i32_0 : i32, i32, i32
  }
  func.func @transform_2(%arg0: i32) -> (i32, i32, i32) {
    %c0_i32 = arith.constant 0 : i32
    %c0_i32_0 = arith.constant 0 : i32
    %c0_i32_1 = arith.constant 0 : i32
    return %arg0, %c0_i32, %c0_i32_0 : i32, i32, i32
  }
  func.func @transform_3(%arg0: i32) -> (i32, i32, i32) {
    %c0_i32 = arith.constant 0 : i32
    %c0_i32_0 = arith.constant 0 : i32
    %c0_i32_1 = arith.constant 0 : i32
    %c0_i32_2 = arith.constant 0 : i32
    return %c0_i32, %c0_i32_0, %c0_i32_1 : i32, i32, i32
  }
  func.func @transform_4(%arg0: i32) -> (i32, i32, i32) {
    %c0_i32 = arith.constant 0 : i32
    %c0_i32_0 = arith.constant 0 : i32
    %c0_i32_1 = arith.constant 0 : i32
    %c0_i32_2 = arith.constant 0 : i32
    return %c0_i32, %c0_i32_0, %c0_i32_1 : i32, i32, i32
  }
  func.func @transform_5(%arg0: i32) -> (i32, i32, i32) {
    %c0_i32 = arith.constant 0 : i32
    %c0_i32_0 = arith.constant 0 : i32
    %c0_i32_1 = arith.constant 0 : i32
    %c0_i32_2 = arith.constant 0 : i32
    return %c0_i32, %c0_i32_0, %c0_i32_1 : i32, i32, i32
  }
  func.func @transform_6(%arg0: i32) -> (i32, i32, i32) {
    %c0_i32 = arith.constant 0 : i32
    %c0_i32_0 = arith.constant 0 : i32
    %c0_i32_1 = arith.constant 0 : i32
    %c0_i32_2 = arith.constant 0 : i32
    return %c0_i32, %c0_i32_0, %c0_i32_1 : i32, i32, i32
  }
  func.func @transform_7(%arg0: i32) -> (i32, i32, i32) {
    %c0_i32 = arith.constant 0 : i32
    %c0_i32_0 = arith.constant 0 : i32
    %c0_i32_1 = arith.constant 0 : i32
    %c0_i32_2 = arith.constant 0 : i32
    return %c0_i32, %c0_i32_0, %c0_i32_1 : i32, i32, i32
  }
  func.func @transform_8(%arg0: i32) -> (i32, i32, i32) {
    %c0_i32 = arith.constant 0 : i32
    %c0_i32_0 = arith.constant 0 : i32
    %c0_i32_1 = arith.constant 0 : i32
    %c0_i32_2 = arith.constant 0 : i32
    return %c0_i32, %c0_i32_0, %c0_i32_1 : i32, i32, i32
  }
  func.func @transform_9(%arg0: i32) -> (i32, i32) {
    %c0_i32 = arith.constant 0 : i32
    %c0_i32_0 = arith.constant 0 : i32
    %c0_i32_1 = arith.constant 0 : i32
    return %c0_i32, %c0_i32_0 : i32, i32
  }
  func.func @transform_10(%arg0: i32) -> (i32, i32) {
    %c0_i32 = arith.constant 0 : i32
    %c0_i32_0 = arith.constant 0 : i32
    %c0_i32_1 = arith.constant 0 : i32
    return %c0_i32, %c0_i32_0 : i32, i32
  }
  func.func @transform_11(%arg0: i32) -> (i32, i32, i32) {
    %c0_i32 = arith.constant 0 : i32
    %c0_i32_0 = arith.constant 0 : i32
    %c0_i32_1 = arith.constant 0 : i32
    %c0_i32_2 = arith.constant 0 : i32
    return %c0_i32, %c0_i32_0, %c0_i32_1 : i32, i32, i32
  }
  func.func @transform_12(%arg0: i32) -> (i32, i32, i32) {
    %c0_i32 = arith.constant 0 : i32
    %c0_i32_0 = arith.constant 0 : i32
    %c0_i32_1 = arith.constant 0 : i32
    %c0_i32_2 = arith.constant 0 : i32
    return %c0_i32, %c0_i32_0, %c0_i32_1 : i32, i32, i32
  }
  func.func @transform_13(%arg0: i32) -> (i32, i32, i32) {
    %c0_i32 = arith.constant 0 : i32
    %c0_i32_0 = arith.constant 0 : i32
    %c0_i32_1 = arith.constant 0 : i32
    return %arg0, %c0_i32, %c0_i32_0 : i32, i32, i32
  }
}

</mosaic_0001>

<bundles_post_ra>
// kernel: decoder_layer_forward.1
= control target key start
LH: loop header
LB: loop body
LE: loop exit
PB: predicated region body
PF: predicated region fallthrough
CT: control target
= control target key end

     0   :  { %s6842_s0 = inlined_call_operand.vmem [shape: f32[2,8,32], index: 0, kind: input, shape index: {}]   ;;  %s6843_s1 = inlined_call_operand.vmem [shape: f32[2,8,32], index: 1, kind: input, shape index: {}]   ;;  %s6844_s2 = inlined_call_operand.vmem [shape: f32[2,8,8], index: 2, kind: input, shape index: {}]   ;;  %s6845_s3 = inlined_call_operand.vmem [shape: f32[12,32,8], index: 3, kind: input, shape index: {}]   ;;  %s6846_s4 = inlined_call_operand.vmem [shape: f32[12,1,8], index: 4, kind: input, shape index: {}]   ;;  %s6847_s5 = inlined_call_operand.vmem [shape: f32[4,8,32], index: 5, kind: input, shape index: {}]   ;;  %s6848_s6 = inlined_call_operand.vmem [shape: f32[12,32,8], index: 6, kind: input, shape index: {}]   ;;  %s6849_s7 = inlined_call_operand.vmem [shape: f32[12,1,8], index: 7, kind: input, shape index: {}]   ;;  %s6850_s8 = inlined_call_operand.vmem [shape: f32[4,8,32], index: 8, kind: input, shape index: {}]   ;;  %s6851_s9 = inlined_call_operand.vmem [shape: f32[32,64], index: 9, kind: input, shape index: {}]   ;;  %s6852_s10 = inlined_call_operand.vmem [shape: f32[64,32], index: 10, kind: input, shape index: {}]   ;;  %s6853_s11 = inlined_call_operand.vmem [shape: f32[7,1,32], index: 11, kind: input, shape index: {}]   ;;  %s6854_s12 = inlined_call_operand.vmem [shape: f32[3,1,64], index: 12, kind: input, shape index: {}]   ;;  %s6855_s13 = inlined_call_operand.hbm [shape: f32[2,8,32], index: 13, kind: output, shape index: {}]  }
   0x1   :  { %6857 = sst [smem:[#allocation7_spill]] %s6842_s0 }
   0x2   :  { %18 = vsyncpa [#allocation3], 0 }
   0x3   :  { %20 = vsyncpa [#allocation3 + $0x1], 0  ;;  %s5969_s25 = smov 0   ;;  %s5971_s26 = smov 0  }
   0x4   :  { %s5973_s27 = smov 0   ;;  %s5975_s28 = smov 0  }
   0x5 LB: > { %6858 = sst [smem:[#allocation5_spill]] %s5888_s27  ;;  %s5990_s29 = sadd.s32 4294967295, %s5892_s28   ;;  %s5892_s28 = sphi %s5975_s28, %s6867_s28   ;;  %s5888_s27 = sphi %s5973_s27, %s6864_s27   ;;  %s5884_s26 = sphi %s5971_s26, %s6866_s26   ;;  %s5880_s25 = sphi %s5969_s25, %s6865_s25  }
   0x6   : > { %s4763_s30 = sadd.s32 4294967294, %s5892_s28   ;;  %s5994_s14 = sadd.s32 1, %s5892_s28  }
   0x7   : > { %s321_s15 = sadd.s32 1, %s5888_s27  ;;  %s318_s16 = ssub.s32 %s5892_s28, %s5994_s14 }
   0x8   : > { %p331_p0 = scmp.ne.s32.totalorder %s5888_s27, %s5884_s26  ;;  %p319_p1 = scmp.eq.s32.totalorder %s318_s16, 0 }
   0x9   : > { %p332_p2 = scmp.eq.s32.totalorder %s5990_s29, 1  ;;  %p337_p3 = scmp.ne.s32.totalorder %s5884_s26, %s5880_s25 }
   0xa   : > { %p338_p4 = scmp.eq.s32.totalorder %s4763_s30, 1  ;;  %p4766_p7 = scmp.ge.s32.totalorder %s5892_s28, 1 }
   0xb   : > { %s6005_s17 = scalar_select %p319_p1, %s5888_s27, %s321_s15  }
   0xc   : > { %p6007_p5 = por %p332_p2, %p331_p0  ;;  %p6011_p6 = por %p338_p4, %p337_p3 }
   0xd   : > { %6859 = sst [smem:[#allocation6_spill]] %s6005_s17  ;;  %p407_p8 = scmp.lt.s32.totalorder %s5892_s28, 3 }
   0xf   : > { %p408_p9 = pnand %p4766_p7, %p407_p8 }
  0x10   : > { %v4781_v0 = vld [vmem:[%s6845_s3 + $0x80] sm:$0xff] (!%p408_p9)  ;;  %v4782_v1 = vld [vmem:[%s6845_s3 + $0x88] sm:$0xff] (!%p408_p9)  ;;  %v5894_v3 = vmov (!%p408_p9), 0.0|0.0   ;;  %v4783_v6 = vld [vmem:[%s6845_s3 + $0x90] sm:$0xff] (!%p408_p9)  ;;  %p458_p10 = scmp.lt.s32.totalorder (!%p408_p9), %s5990_s29, 1  ;;  %vm5895_vm0 = vmmov (!%p408_p9), 0  }
  0x11   : > { %411 = sbr.rel (%p408_p9) target bundleno = 9567 (0x255f), region = 72  ;;  %v493_v2 = vld [vmem:[%s6845_s3] sm:$0xff] (!%p408_p9)  ;;  %5593 = vmatprep.subr.bf16.mxu1 (!%p408_p9), %v5894_v3  ;;  %v5594_v4 = vpack.c.bf16 (!%p408_p9), %v4782_v1, %v4781_v0  ;;  %5587 = vmatprep.subr.bf16.mxu0 (!%p408_p9), %v5894_v3  ;;  %v494_v5 = vld [vmem:[%s6845_s3 + $0x8] sm:$0xff] (!%p408_p9)  ;;  %v4784_v7 = vld [vmem:[%s6845_s3 + $0x98] sm:$0xff] (!%p408_p9)  ;;  %v5896_v11 = vmov (!%p408_p9), 0.0   ;;  %s6862_s0 = sld [smem:[#allocation7_spill]] (!%p408_p9) }
  0x12   : > { %v5588_v8 = vpack.c.bf16 (!%p408_p9), %v494_v5, %v493_v2  ;;  %v495_v9 = vld [vmem:[%s6845_s3 + $0x10] sm:$0xff] (!%p408_p9)  ;;  %v496_v10 = vld [vmem:[%s6845_s3 + $0x18] sm:$0xff] (!%p408_p9)  ;;  %5192 = vmatprep.mubr.msk.f32.mxu1 (!%p408_p9), %vm5895_vm0, %v5896_v11  ;;  %5181 = vmatprep.mubr.msk.f32.mxu0 (!%p408_p9), %vm5895_vm0, %v5896_v11  ;;  %v5597_v12 = vpack.c.bf16 (!%p408_p9), %v4784_v7, %v4783_v6  ;;  %v4788_v14 = vld [vmem:[%s6845_s3 + $0x100] sm:$0xff] (!%p408_p9)  ;;  %vm504_vm1 = vcmask (!%p408_p9), 261120   ;;  %vm744_vm2 = vcmask (!%p408_p9), 64512   ;;  %s4988_s21 = sshll.u32 (!%p408_p9), %s5990_s29, 7 }
  0x13   : > { %5595 = vmatpush3.bf16.msra.mxu1 (!%p408_p9), %v5594_v4  ;;  %v5591_v13 = vpack.c.bf16 (!%p408_p9), %v496_v10, %v495_v9  ;;  %v4789_v15 = vld [vmem:[%s6845_s3 + $0x108] sm:$0xff] (!%p408_p9)  ;;  %v4790_v18 = vld [vmem:[%s6845_s3 + $0x110] sm:$0xff] (!%p408_p9)  ;;  %v4791_v19 = vld [vmem:[%s6845_s3 + $0x118] sm:$0xff] (!%p408_p9)  ;;  %v5897_v35 = vmov (!%p408_p9), -1e+09   ;;  %vm4575_vm4 = vcmask (!%p408_p9), 523264  }
  0x14   : > { %5589 = vmatpush3.bf16.msra.mxu0 (!%p408_p9), %v5588_v8  ;;  %5596 = vmatprep.subr.bf16.mxu1 (!%p408_p9), %v5894_v3  ;;  %v5600_v17 = vpack.c.bf16 (!%p408_p9), %v4789_v15, %v4788_v14  ;;  %v5603_v20 = vpack.c.bf16 (!%p408_p9), %v4791_v19, %v4790_v18  ;;  %v4786_v21 = vld [vmem:[%s6846_s4 + $0x4] ss:$0 sm:$0xff] (!%p408_p9)  ;;  %v4779_v22 = vld [vmem:[%s6846_s4] ss:$0 sm:$0xff] (!%p408_p9)  ;;  %v4793_v29 = vld [vmem:[%s6846_s4 + $0x8] ss:$0 sm:$0xff] (!%p408_p9) }
  0x15   : > { %5590 = vmatprep.subr.bf16.mxu0 (!%p408_p9), %v5894_v3  ;;  %v907_v46 = vld [vmem:[%s6847_s5] sm:$0xff] (!%p408_p9)  ;;  %v4801_v51 = vld [vmem:[%s6845_s3 + $0x28] sm:$0xff] (!%p408_p9)  ;;  %v4802_v53 = vld [vmem:[%s6845_s3 + $0x30] sm:$0xff] (!%p408_p9) }
  0x16   : > { %v4800_v50 = vld [vmem:[%s6845_s3 + $0x20] sm:$0xff] (!%p408_p9)  ;;  %v4803_v54 = vld [vmem:[%s6845_s3 + $0x38] sm:$0xff] (!%p408_p9)  ;;  %v4808_v57 = vld [vmem:[%s6845_s3 + $0xa8] sm:$0xff] (!%p408_p9) }
  0x17   : > { %5598 = vmatpush3.bf16.msra.mxu1 (!%p408_p9), %v5597_v12  ;;  %v5606_v52 = vpack.c.bf16 (!%p408_p9), %v4801_v51, %v4800_v50  ;;  %v5609_v55 = vpack.c.bf16 (!%p408_p9), %v4803_v54, %v4802_v53  ;;  %v4807_v56 = vld [vmem:[%s6845_s3 + $0xa0] sm:$0xff] (!%p408_p9)  ;;  %v4809_v59 = vld [vmem:[%s6845_s3 + $0xb0] sm:$0xff] (!%p408_p9)  ;;  %v4810_v60 = vld [vmem:[%s6845_s3 + $0xb8] sm:$0xff] (!%p408_p9) }
  0x18   : > { %s459_s15 = scalar_select %p458_p10, %s5990_s29, 1  ;;  %5592 = vmatpush3.bf16.msra.mxu0 %v5591_v13  ;;  %5211 = vmatprep.subr.mxu1 %v5896_v11  ;;  %v5612_v58 = vpack.c.bf16 %v4808_v57, %v4807_v56  ;;  %v5615_v63 = vpack.c.bf16 %v4810_v60, %v4809_v59  ;;  %v4812_v5 = vld [vmem:[%s6846_s4 + $0x5] ss:$0 sm:$0xff]  ;;  %v4805_v6 = vld [vmem:[%s6846_s4 + $0x1] ss:$0 sm:$0xff]  ;;  %v4815_v13 = vld [vmem:[%s6845_s3 + $0x128] sm:$0xff] }
  0x19   : > { %5599 = vmatprep.subr.bf16.mxu0 %v5894_v3  ;;  %v4814_v12 = vld [vmem:[%s6845_s3 + $0x120] sm:$0xff]  ;;  %v4816_v14 = vld [vmem:[%s6845_s3 + $0x130] sm:$0xff]  ;;  %s5898_s29 = smov [#allocation2]  }
  0x1a   : > { %s6051_s16 = sshll.u32 %s459_s15, 3  ;;  %v5618_v15 = vpack.c.bf16 %v4815_v13, %v4814_v12  ;;  %v4799_v54 = vld [vmem:[%s6853_s11 + $0x4] ss:$0 sm:$0xff]  ;;  %v4838_v59 = vld [vmem:[%s6846_s4 + $0x6] ss:$0 sm:$0xff]  ;;  %s6799_s15 = scalar_lea.hbm %s6855_s13, %s4988_s21 }
  0x1b   : > { %s461_s24 = scalar_lea.vmem %s6862_s0, %s6051_s16  ;;  %s469_s17 = scalar_lea.vmem %s6844_s2, %s6051_s16  ;;  %v4831_v60 = vld [vmem:[%s6846_s4 + $0x2] ss:$0 sm:$0xff] }
  0x1c   : > { %v6063_v16 = vld [vmem:[%s461_s24] sm:$0xff]  ;;  %s465_s30 = scalar_lea.vmem %s6843_s1, %s6051_s16  ;;  %s455_s16 = sand.u32 1, %s5884_s26  }
  0x1d   : > { %5193 = vmatmul.mubr.msk.f32.vlgmr.msra.gmra.mrb[0].mxu1 %vm504_vm1, %v6063_v16  ;;  %5182 = vmatmul.mubr.msk.f32.vlgmr.msra.gmra.mrb[0].mxu0 %vm504_vm1, %v6063_v16  ;;  %v472_v33 = vld [vmem:[%s469_s17] sm:$0xff]  ;;  %s4767_s20 = sshll.u32 %s455_s16, 3  ;;  %s4667_s27 = scalar_lea.sflag [#allocation3], %s455_s16 }
  0x1e   : > { %5213 = vmatprep.mubr.msk.f32.mxu1 %vm5895_vm0, %v5896_v11  ;;  %5601 = vmatpush3.bf16.msra.mxu0 %v5600_v17  ;;  %vm473_vm3 = vcmp.gt.f32.partialorder %v472_v33, 0.0  ;;  %v4817_v17 = vld [vmem:[%s6845_s3 + $0x138] sm:$0xff]  ;;  %v4824_v33 = vld [vmem:[%s6847_s5 + $0x8] sm:$0xff]  ;;  %s457_s22 = scalar_lea.vmem [#allocation2], %s4767_s20  ;;  %s5834_s17 = sshll.u32 %s5898_s29, 4  ;;  %s5835_s17 = int_to_ptr.vmem [resolvable:$false] %s5834_s17 }
  0x1f   : > { %5203 = vmatprep.mubr.msk.f32.mxu0 %vm5895_vm0, %v5896_v11  ;;  %5602 = vmatprep.subr.bf16.mxu0 %v5894_v3  ;;  %v6106_v36 = vsel %vm473_vm3, 0.0, %v5897_v35  ;;  %v5621_v18 = vpack.c.bf16 %v4817_v17, %v4816_v14  ;;  %s4680_s23 = sshll.u32 %s457_s22, 4  ;;  %s5836_s20 = scalar_lea.vmem %s5835_s17, 256  ;;  %s6801_s23 = int_to_ptr.vmem [resolvable:$true] %s4680_s23 }
  0x20   : > { %s5830_s0 = scalar_lea.vmem %s6801_s23, 128  ;;  %p5837_p0 = scmp.lt.s32.totalorder %s6801_s23, %s5835_s17 }
  0x21   : > { %p5831_p11 = scmp.ne.s32.totalorder %s6801_s23, %s5830_s0  ;;  %p5838_p1 = scmp.lt.s32.totalorder %s5836_s20, %s5830_s0 }
  0x22   : > { %5604 = vmatpush3.bf16.msra.mxu0 %v5603_v20 }
  0x23   : > { %5206 = vmatprep.subr.mxu0 %v5896_v11  ;;  %p5832_p12 = pnand %p5831_p11, %p6007_p5  ;;  %p5839_p2 = por %p5838_p1, %p5837_p0 }
  0x25   : > { %5204 = vmatmul.mubr.msk.f32.vlgmr.msra.gmra.mrb[2].mxu0 %vm504_vm1, %v6063_v16  ;;  %p5833_p13 = pneg %p5832_p12 }
  0x26   : > { %5208 = vmatprep.mubr.msk.f32.mxu0 %vm5895_vm0, %v5896_v11 }
  0x27   : > { %p5840_p3 = pnand %p5839_p2, %p5833_p13 }
  0xf0   : > { %v657_v23 = vpop.f32.mrb[0].mxu1  ;;  %v574_v26 = vpop.f32.mrb[0].mxu0 }
  0xf1   : > { %v658_v24 = vadd.f32 %v4786_v21, %v657_v23  ;;  %v5194_v25 = vpop.f32.mrb[1].mxu1  ;;  %v575_v27 = vadd.f32 %v4779_v22, %v574_v26  ;;  %v5183_v28 = vpop.f32.mrb[1].mxu0 }
  0xf3   : > { %5207 = vmatpush3.xpose.msk.msra.mxu0 %vm744_vm2, %v658_v24 }
  0xf4   : > { %5216 = vmatprep.subr.mxu0 %v5896_v11 }
  0xf6   : > { %5209 = vmatmul.mubr.msk.f32.vlgmr.msra.gmra.mrb[4].mxu0 %vm744_vm2, %v575_v27 }
  0xf7   : > { %5218 = vmatprep.mubr.msk.f32.mxu0 %vm5895_vm0, %v5896_v11  ;;  %5217 = vmatpush3.msra.mxu0 %v907_v46 }
  0xf8   : > { %v740_v30 = vpop.f32.mrb[2].mxu0  ;;  %5611 = vmatprep.subr.bf16.mxu0 %v5894_v3 }
  0xf9   : > { %v741_v31 = vadd.f32 %v4793_v29, %v740_v30  ;;  %v5205_v32 = vpop.f32.mrb[3].mxu0  ;;  %v4819_v30 = vld [vmem:[%s6846_s4 + $0x9] ss:$0 sm:$0xff] }
  0xfb   : > { %5212 = vmatpush3.msra.mxu1 %v741_v31 }
  0xfc   : > { %5605 = vmatprep.subr.bf16.mxu1 %v5894_v3 }
 0x1c9   : > { %v817_v34 = vpop.f32.mrb[4].mxu0 }
 0x1ca   : > { %v821_v37 = vmul.f32 0.35355338, %v817_v34  ;;  %v5210_v38 = vpop.f32.mrb[5].mxu0 }
 0x1cb   : > { %v4826_v38 = vld [vmem:[%s6845_s3 + $0x40] sm:$0xff] }
 0x1cc   : > { %v822_v39 = vadd.f32 %v821_v37, %v6106_v36 }
 0x1ce   : > { %v823_v40 = vsel %vm744_vm2, %v822_v39, -inf }
 0x1cf   : > { %824 = vmax.xlane.f32.xlu0 %v823_v40 }
 0x25c   : > { %v825_v41 = vpop.xlane.xlu0 %824 }
 0x25d   : > { %v826_v42 = vsub.f32 %v822_v39, %v825_v41  ;;  %v4827_v39 = vld [vmem:[%s6845_s3 + $0x48] sm:$0xff]  ;;  %v4828_v41 = vld [vmem:[%s6845_s3 + $0x50] sm:$0xff] }
 0x25e   : > { %v5624_v40 = vpack.c.bf16 %v4827_v39, %v4826_v38  ;;  %v4861_v38 = vld [vmem:[%s6845_s3 + $0xf0] sm:$0xff]  ;;  %v4862_v39 = vld [vmem:[%s6845_s3 + $0xf8] sm:$0xff] }
 0x25f   : > { %v827_v43 = vmul.f32 1.442695, %v826_v42  ;;  %v4829_v42 = vld [vmem:[%s6845_s3 + $0x58] sm:$0xff] }
 0x261   : > { %5792 = vpow2.f32 %v827_v43  ;;  %v5627_v43 = vpack.c.bf16 %v4829_v42, %v4828_v41  ;;  %v5651_v42 = vpack.c.bf16 %v4862_v39, %v4861_v38  ;;  %v2480_v38 = vld [vmem:[%s6848_s6 + $0x10] sm:$0xff]  ;;  %v2481_v39 = vld [vmem:[%s6848_s6 + $0x18] sm:$0xff] }
 0x26b   : > { %v5793_v44 = vpop.eup %5792 }
 0x26c   : > { %v829_v45 = vsel %vm744_vm2, %v5793_v44, 0.0 }
 0x26d   : > { %830 = vadd.xlane.f32.xlu0 %v829_v45  ;;  %v4834_v45 = vld [vmem:[%s6845_s3 + $0xc8] sm:$0xff] }
 0x2fa   : > { %v831_v47 = vpop.xlane.xlu0 %830 }
 0x2fb   : > { %5794 = vrcp.f32 %v831_v47  ;;  %v4835_v47 = vld [vmem:[%s6845_s3 + $0xd0] sm:$0xff] }
 0x305   : > { %v5795_v48 = vpop.eup %5794 }
 0x306   : > { %v833_v49 = vmul.f32 %v5795_v48, %v5793_v44  ;;  %v4833_v44 = vld [vmem:[%s6845_s3 + $0xc0] sm:$0xff]  ;;  %v4836_v48 = vld [vmem:[%s6845_s3 + $0xd8] sm:$0xff] }
 0x307   : > { %v5630_v46 = vpack.c.bf16 %v4834_v45, %v4833_v44  ;;  %v5633_v51 = vpack.c.bf16 %v4836_v48, %v4835_v47  ;;  %v4864_v48 = vld [vmem:[%s6846_s4 + $0x7] ss:$0 sm:$0xff] }
 0x308   : > { %5214 = vmatmul.mubr.msk.f32.vlgmr.msra.gmra.mrb[2].mxu1 %vm744_vm2, %v833_v49 }
 0x309   : > { %5229 = vmatprep.mubr.msk.f32.mxu1 %vm5895_vm0, %v5896_v11  ;;  %5607 = vmatpush3.bf16.msra.mxu1 %v5606_v52 }
 0x30a   : > { %5608 = vmatprep.subr.bf16.mxu1 %v5894_v3 }
 0x30d   : > { %5610 = vmatpush3.bf16.msra.mxu1 %v5609_v55 }
 0x30e   : > { %5617 = vmatprep.subr.bf16.mxu1 %v5894_v3 }
 0x310   : > { %5230 = vmatmul.mubr.msk.f32.vlgmr.msra.gmra.mrb[4].mxu1 %vm504_vm1, %v6063_v16 }
 0x311   : > { %5251 = vmatprep.mubr.msk.f32.mxu1 %vm5895_vm0, %v5896_v11  ;;  %5619 = vmatpush3.bf16.msra.mxu1 %v5618_v15 }
 0x312   : > { %5620 = vmatprep.subr.bf16.mxu1 %v5894_v3 }
 0x315   : > { %5622 = vmatpush3.bf16.msra.mxu1 %v5621_v18 }
 0x316   : > { %5264 = vmatprep.subr.mxu1 %v5896_v11 }
 0x318   : > { %5252 = vmatmul.mubr.msk.f32.vlgmr.msra.gmra.mrb[6].mxu1 %vm504_vm1, %v6063_v16 }
 0x319   : > { %5266 = vmatprep.mubr.msk.f32.mxu1 %vm5895_vm0, %v5896_v11  ;;  %5265 = vmatpush3.msra.mxu1 %v4824_v33 }
 0x31a   : > { %5629 = vmatprep.subr.bf16.mxu1 %v5894_v3 }
 0x3db   : > { %v903_v61 = vpop.f32.mrb[2].mxu1 }
 0x3dc   : > { %v5215_v62 = vpop.f32.mrb[3].mxu1  ;;  %5219 = vmatmul.mubr.msk.f32.vlgmr.msra.gmra.mrb[6].mxu0 %vm744_vm2, %v903_v61 }
 0x3dd   : > { %5613 = vmatpush3.bf16.msra.mxu0 %v5612_v58  ;;  %5240 = vmatprep.mubr.msk.f32.mxu0 %vm5895_vm0, %v5896_v11 }
 0x3de   : > { %5614 = vmatprep.subr.bf16.mxu0 %v5894_v3 }
 0x3e1   : > { %5616 = vmatpush3.bf16.msra.mxu0 %v5615_v63 }
 0x3e2   : > { %5254 = vmatprep.subr.mxu0 %v5896_v11 }
 0x3e3   : > { %v1067_v0 = vpop.f32.mrb[4].mxu1 }
 0x3e4   : > { %5241 = vmatmul.mubr.msk.f32.vlgmr.msra.gmra.mrb[8].mxu0 %vm504_vm1, %v6063_v16  ;;  %v5231_v1 = vpop.f32.mrb[5].mxu1  ;;  %v1068_v10 = vadd.f32 %v4805_v6, %v1067_v0  ;;  %v4843_v6 = vld [vmem:[%s6845_s3 + $0x158] sm:$0xff] }
 0x3e5   : > { %5256 = vmatprep.mubr.msk.f32.mxu0 %vm5895_vm0, %v5896_v11  ;;  %v4840_v1 = vld [vmem:[%s6845_s3 + $0x140] sm:$0xff] }
 0x3eb   : > { %v1233_v29 = vpop.f32.mrb[6].mxu1 }
 0x3ec   : > { %v5253_v31 = vpop.f32.mrb[7].mxu1  ;;  %v1234_v32 = vadd.f32 %v4819_v30, %v1233_v29  ;;  %v4853_v29 = vld [vmem:[%s6845_s3 + $0x68] sm:$0xff] }
 0x3ed   : > { %v4854_v31 = vld [vmem:[%s6845_s3 + $0x70] sm:$0xff] }
 0x4af   : > { %v6157_v2 = vpop.f32.mrb[6].mxu0 }
 0x4b0   : > { %v5220_v4 = vpop.f32.mrb[7].mxu0  ;;  %v987_v55 = vadd.f32 %v4799_v54, %v6157_v2  ;;  %v4841_v2 = vld [vmem:[%s6845_s3 + $0x148] sm:$0xff]  ;;  %v4866_v54 = vld [vmem:[%s6845_s3 + $0x160] sm:$0xff] }
 0x4b1   : > { %v4842_v4 = vld [vmem:[%s6845_s3 + $0x150] sm:$0xff] }
 0x4b7   : > { %v1150_v7 = vpop.f32.mrb[8].mxu0 }
 0x4b8   : > { %v1151_v8 = vadd.f32 %v4812_v5, %v1150_v7  ;;  %v5242_v9 = vpop.f32.mrb[9].mxu0  ;;  %v5636_v5 = vpack.c.bf16 %v4841_v2, %v4840_v1  ;;  %v5639_v7 = vpack.c.bf16 %v4843_v6, %v4842_v4 }
 0x4ba   : > { %5255 = vmatpush3.xpose.msk.msra.mxu0 %vm744_vm2, %v1151_v8 }
 0x4bb   : > { %5259 = vmatprep.subr.mxu0 %v5896_v11 }
 0x4bd   : > { %5257 = vmatmul.mubr.msk.f32.vlgmr.msra.gmra.mrb[10].mxu0 %vm744_vm2, %v1068_v10 }
 0x4be   : > { %5261 = vmatprep.mubr.msk.f32.mxu0 %vm5895_vm0, %v5896_v11  ;;  %5260 = vmatpush3.msra.mxu0 %v1234_v32  ;;  %v4855_v32 = vld [vmem:[%s6845_s3 + $0x78] sm:$0xff] }
 0x4bf   : > { %5623 = vmatprep.subr.bf16.mxu0 %v5894_v3  ;;  %v5645_v33 = vpack.c.bf16 %v4855_v32, %v4854_v31  ;;  %v2478_v31 = vld [vmem:[%s6848_s6] sm:$0xff]  ;;  %v2479_v32 = vld [vmem:[%s6848_s6 + $0x8] sm:$0xff] }
 0x590   : > { %v1309_v19 = vpop.f32.mrb[10].mxu0 }
 0x591   : > { %v1313_v20 = vmul.f32 0.35355338, %v1309_v19  ;;  %v5258_v21 = vpop.f32.mrb[11].mxu0 }
 0x592   : > { %v4845_v21 = vld [vmem:[%s6846_s4 + $0xa] ss:$0 sm:$0xff] }
 0x593   : > { %v1314_v22 = vadd.f32 %v1313_v20, %v6106_v36 }
 0x595   : > { %v1315_v23 = vsel %vm744_vm2, %v1314_v22, -inf }
 0x596   : > { %1316 = vmax.xlane.f32.xlu1 %v1315_v23 }
 0x623   : > { %v1317_v24 = vpop.xlane.xlu1 %1316 }
 0x624   : > { %v1318_v25 = vsub.f32 %v1314_v22, %v1317_v24  ;;  %v4850_v24 = vld [vmem:[%s6847_s5 + $0x10] sm:$0xff] }
 0x626   : > { %v1319_v26 = vmul.f32 1.442695, %v1318_v25 }
 0x628   : > { %5796 = vpow2.f32 %v1319_v26 }
 0x632   : > { %v5797_v27 = vpop.eup %5796 }
 0x633   : > { %v1321_v28 = vsel %vm744_vm2, %v5797_v27, 0.0 }
 0x634   : > { %1322 = vadd.xlane.f32.xlu1 %v1321_v28  ;;  %v4852_v28 = vld [vmem:[%s6845_s3 + $0x60] sm:$0xff] }
 0x635   : > { %v5642_v30 = vpack.c.bf16 %v4853_v29, %v4852_v28  ;;  %v4882_v29 = vld [vmem:[%s6848_s6 + $0x80] sm:$0xff] }
 0x6c1   : > { %v1323_v34 = vpop.xlane.xlu1 %1322 }
 0x6c2   : > { %5798 = vrcp.f32 %v1323_v34  ;;  %v4859_v34 = vld [vmem:[%s6845_s3 + $0xe0] sm:$0xff] }
 0x6cc   : > { %v5799_v35 = vpop.eup %5798 }
 0x6cd   : > { %v1325_v37 = vmul.f32 %v5799_v35, %v5797_v27  ;;  %v4860_v35 = vld [vmem:[%s6845_s3 + $0xe8] sm:$0xff] }
 0x6cf   : > { %5262 = vmatmul.mubr.msk.f32.vlgmr.msra.gmra.mrb[12].mxu0 %vm744_vm2, %v1325_v37  ;;  %v5648_v37 = vpack.c.bf16 %v4860_v35, %v4859_v34  ;;  %v5660_v34 = vpack.c.bf16 %v2479_v32, %v2478_v31  ;;  %v4885_v35 = vld [vmem:[%s6848_s6 + $0x98] sm:$0xff] }
 0x6d0   : > { %5277 = vmatprep.mubr.msk.f32.mxu0 %vm5895_vm0, %v5896_v11  ;;  %5625 = vmatpush3.bf16.msra.mxu0 %v5624_v40  ;;  %v4911_v31 = vld [vmem:[%s6848_s6 + $0xb8] sm:$0xff] }
 0x6d1   : > { %5626 = vmatprep.subr.bf16.mxu0 %v5894_v3 }
 0x6d4   : > { %5628 = vmatpush3.bf16.msra.mxu0 %v5627_v43 }
 0x6d5   : > { %5635 = vmatprep.subr.bf16.mxu0 %v5894_v3 }
 0x6d7   : > { %5278 = vmatmul.mubr.msk.f32.vlgmr.msra.gmra.mrb[14].mxu0 %vm504_vm1, %v6063_v16 }
 0x6d8   : > { %5299 = vmatprep.mubr.msk.f32.mxu0 %vm5895_vm0, %v5896_v11  ;;  %5637 = vmatpush3.bf16.msra.mxu0 %v5636_v5 }
 0x6d9   : > { %5638 = vmatprep.subr.bf16.mxu0 %v5894_v3 }
 0x6dc   : > { %5640 = vmatpush3.bf16.msra.mxu0 %v5639_v7 }
 0x6dd   : > { %5312 = vmatprep.subr.mxu0 %v5896_v11 }
 0x6df   : > { %5300 = vmatmul.mubr.msk.f32.vlgmr.msra.gmra.mrb[16].mxu0 %vm504_vm1, %v6063_v16 }
 0x6e0   : > { %5314 = vmatprep.mubr.msk.f32.mxu0 %vm5895_vm0, %v5896_v11  ;;  %5313 = vmatpush3.msra.mxu0 %v4850_v24 }
 0x6e1   : > { %5647 = vmatprep.subr.bf16.mxu0 %v5894_v3 }
 0x7a2   : > { %v1395_v49 = vpop.f32.mrb[12].mxu0 }
 0x7a3   : > { %v5263_v50 = vpop.f32.mrb[13].mxu0  ;;  %5267 = vmatmul.mubr.msk.f32.vlgmr.msra.gmra.mrb[8].mxu1 %vm744_vm2, %v1395_v49  ;;  %v4857_v49 = vld [vmem:[%s6846_s4 + $0x3] ss:$0 sm:$0xff] }
 0x7a4   : > { %5631 = vmatpush3.bf16.msra.mxu1 %v5630_v46  ;;  %5288 = vmatprep.mubr.msk.f32.mxu1 %vm5895_vm0, %v5896_v11 }
 0x7a5   : > { %5632 = vmatprep.subr.bf16.mxu1 %v5894_v3 }
 0x7a8   : > { %5634 = vmatpush3.bf16.msra.mxu1 %v5633_v51 }
 0x7a9   : > { %5302 = vmatprep.subr.mxu1 %v5896_v11 }
 0x7aa   : > { %v1554_v52 = vpop.f32.mrb[14].mxu0 }
 0x7ab   : > { %5289 = vmatmul.mubr.msk.f32.vlgmr.msra.gmra.mrb[10].mxu1 %vm504_vm1, %v6063_v16  ;;  %v5279_v53 = vpop.f32.mrb[15].mxu0  ;;  %v1555_v0 = vadd.f32 %v4831_v60, %v1554_v52 }
 0x7ac   : > { %5304 = vmatprep.mubr.msk.f32.mxu1 %vm5895_vm0, %v5896_v11 }
 0x7b2   : > { %v1720_v20 = vpop.f32.mrb[16].mxu0 }
 0x7b3   : > { %v5301_v22 = vpop.f32.mrb[17].mxu0  ;;  %v1721_v23 = vadd.f32 %v4845_v21, %v1720_v20 }
 0x876   : > { %v1470_v56 = vpop.f32.mrb[8].mxu1 }
 0x877   : > { %v6245_v57 = vadd.f32 %v1470_v56, %v987_v55  ;;  %v5268_v58 = vpop.f32.mrb[9].mxu1  ;;  %v4867_v55 = vld [vmem:[%s6845_s3 + $0x168] sm:$0xff]  ;;  %v4868_v56 = vld [vmem:[%s6845_s3 + $0x170] sm:$0xff] }
 0x878   : > { %v4869_v58 = vld [vmem:[%s6845_s3 + $0x178] sm:$0xff] }
 0x87e   : > { %v1637_v61 = vpop.f32.mrb[10].mxu1 }
 0x87f   : > { %v1638_v62 = vadd.f32 %v4838_v59, %v1637_v61  ;;  %v5290_v63 = vpop.f32.mrb[11].mxu1  ;;  %v5657_v59 = vpack.c.bf16 %v4869_v58, %v4868_v56 }
 0x881   : > { %5303 = vmatpush3.xpose.msk.msra.mxu1 %vm744_vm2, %v1638_v62 }
 0x882   : > { %5307 = vmatprep.subr.mxu1 %v5896_v11 }
 0x884   : > { %5305 = vmatmul.mubr.msk.f32.vlgmr.msra.gmra.mrb[12].mxu1 %vm744_vm2, %v1555_v0 }
 0x885   : > { %5309 = vmatprep.mubr.msk.f32.mxu1 %vm5895_vm0, %v5896_v11  ;;  %5308 = vmatpush3.msra.mxu1 %v1721_v23 }
 0x886   : > { %5641 = vmatprep.subr.bf16.mxu1 %v5894_v3 }
 0x957   : > { %v1796_v8 = vpop.f32.mrb[12].mxu1 }
 0x958   : > { %v1800_v9 = vmul.f32 0.35355338, %v1796_v8  ;;  %v5306_v10 = vpop.f32.mrb[13].mxu1  ;;  %v4871_v8 = vld [vmem:[%s6846_s4 + $0xb] ss:$0 sm:$0xff] }
 0x95a   : > { %v1801_v12 = vadd.f32 %v1800_v9, %v6106_v36 }
 0x95c   : > { %v1802_v13 = vsel %vm744_vm2, %v1801_v12, -inf }
 0x95d   : > { %1803 = vmax.xlane.f32.xlu0 %v1802_v13 }
 0x9ea   : > { %v1804_v14 = vpop.xlane.xlu0 %1803 }
 0x9eb   : > { %v1805_v15 = vsub.f32 %v1801_v12, %v1804_v14  ;;  %v4876_v12 = vld [vmem:[%s6847_s5 + $0x18] sm:$0xff] }
 0x9ed   : > { %v1806_v17 = vmul.f32 1.442695, %v1805_v15 }
 0x9ef   : > { %5800 = vpow2.f32 %v1806_v17 }
 0x9f9   : > { %v5801_v18 = vpop.eup %5800 }
 0x9fa   : > { %v1808_v19 = vsel %vm744_vm2, %v5801_v18, 0.0 }
 0x9fb   : > { %1809 = vadd.xlane.f32.xlu1 %v1808_v19 }
 0xa88   : > { %v1810_v25 = vpop.xlane.xlu1 %1809 }
 0xa89   : > { %5802 = vrcp.f32 %v1810_v25 }
 0xa93   : > { %v5803_v26 = vpop.eup %5802 }
 0xa94   : > { %v1812_v27 = vmul.f32 %v5803_v26, %v5801_v18 }
 0xa96   : > { %5310 = vmatmul.mubr.msk.f32.vlgmr.msra.gmra.mrb[14].mxu1 %vm744_vm2, %v1812_v27 }
 0xa97   : > { %5325 = vmatprep.mubr.msk.f32.mxu1 %vm5895_vm0, %v5896_v11  ;;  %5643 = vmatpush3.bf16.msra.mxu1 %v5642_v30  ;;  %v4883_v30 = vld [vmem:[%s6848_s6 + $0x88] sm:$0xff] }
 0xa98   : > { %5644 = vmatprep.subr.bf16.mxu1 %v5894_v3 }
 0xa9b   : > { %5646 = vmatpush3.bf16.msra.mxu1 %v5645_v33  ;;  %v4884_v33 = vld [vmem:[%s6848_s6 + $0x90] sm:$0xff] }
 0xa9c   : > { %5653 = vmatprep.subr.bf16.mxu1 %v5894_v3 }
 0xa9e   : > { %5326 = vmatmul.mubr.msk.f32.vlgmr.msra.gmra.mrb[16].mxu1 %vm504_vm1, %v6063_v16 }
 0xa9f   : > { %5347 = vmatprep.mubr.msk.f32.mxu1 %vm5895_vm0, %v5896_v11 }
 0xb69   : > { %v1882_v40 = vpop.f32.mrb[14].mxu1 }
 0xb6a   : > { %v5311_v41 = vpop.f32.mrb[15].mxu1  ;;  %5315 = vmatmul.mubr.msk.f32.vlgmr.msra.gmra.mrb[18].mxu0 %vm744_vm2, %v1882_v40  ;;  %v6409_v40 = vld [vmem:[%s465_s30] sm:$0xff] }
 0xb6b   : > { %5649 = vmatpush3.bf16.msra.mxu0 %v5648_v37  ;;  %5336 = vmatprep.mubr.msk.f32.mxu0 %vm5895_vm0, %v5896_v11  ;;  %v5669_v37 = vpack.c.bf16 %v4885_v35, %v4884_v33  ;;  %v5663_v41 = vpack.c.bf16 %v2481_v39, %v2480_v38 }
 0xb6c   : > { %5650 = vmatprep.subr.bf16.mxu0 %v5894_v3 }
 0xb6f   : > { %5652 = vmatpush3.bf16.msra.mxu0 %v5651_v42 }
 0xb70   : > { %5350 = vmatprep.subr.mxu0 %v5896_v11 }
 0xb71   : > { %v2041_v43 = vpop.f32.mrb[16].mxu1 }
 0xb72   : > { %5337 = vmatmul.mubr.msk.f32.vlgmr.msra.gmra.mrb[20].mxu0 %vm504_vm1, %v6063_v16  ;;  %v5327_v44 = vpop.f32.mrb[17].mxu1  ;;  %v2042_v53 = vadd.f32 %v4857_v49, %v2041_v43 }
 0xb73   : > { %5352 = vmatprep.mubr.msk.f32.mxu0 %vm5895_vm0, %v5896_v11 }
 0xc3d   : > { %v1957_v45 = vpop.f32.mrb[18].mxu0 }
 0xc3e   : > { %v1961_v46 = vadd.f32 %v1957_v45, %v6245_v57  ;;  %v5316_v47 = vpop.f32.mrb[19].mxu0  ;;  %v5654_v57 = vpack.c.bf16 %v4867_v55, %v4866_v54  ;;  %v4880_v55 = vld [vmem:[%s6849_s7] ss:$0 sm:$0xff] }
 0xc40   : > { %5655 = vmatpush3.bf16.msra.mxu1 %v5654_v57 }
 0xc41   : > { %5656 = vmatprep.subr.bf16.mxu1 %v5894_v3 }
 0xc44   : > { %5658 = vmatpush3.bf16.msra.mxu1 %v5657_v59  ;;  %v4889_v59 = vld [vmem:[%s6848_s6 + $0x100] sm:$0xff] }
 0xc45   : > { %v2124_v50 = vpop.f32.mrb[20].mxu0  ;;  %5360 = vmatprep.subr.mxu1 %v5896_v11 }
 0xc46   : > { %v2125_v51 = vadd.f32 %v4864_v48, %v2124_v50  ;;  %v5338_v52 = vpop.f32.mrb[21].mxu0  ;;  %v4879_v48 = vld [vmem:[%s6853_s11 + $0x1] ss:$0 sm:$0xff] }
 0xc47   : > { %5348 = vmatmul.mubr.msk.f32.vlgmr.msra.gmra.mrb[18].mxu1 %vm504_vm1, %v6063_v16 }
 0xc48   : > { %5351 = vmatpush3.xpose.msk.msra.mxu0 %vm744_vm2, %v2125_v51  ;;  %5362 = vmatprep.mubr.msk.f32.mxu1 %vm5895_vm0, %v5896_v11  ;;  %v4887_v51 = vld [vmem:[%s6849_s7 + $0x4] ss:$0 sm:$0xff] }
 0xc49   : > { %5355 = vmatprep.subr.mxu0 %v5896_v11  ;;  %5361 = vmatpush3.msra.mxu1 %v4876_v12 }
 0xc4a   : > { %5665 = vmatprep.subr.bf16.mxu1 %v5894_v3 }
 0xc4b   : > { %5353 = vmatmul.mubr.msk.f32.vlgmr.msra.gmra.mrb[22].mxu0 %vm744_vm2, %v2042_v53 }
 0xc4c   : > { %5357 = vmatprep.mubr.msk.f32.mxu0 %vm5895_vm0, %v5896_v11 }
 0xd1a   : > { %v2207_v7 = vpop.f32.mrb[18].mxu1 }
 0xd1b   : > { %v5349_v9 = vpop.f32.mrb[19].mxu1  ;;  %v2208_v10 = vadd.f32 %v4871_v8, %v2207_v7 }
 0xd1d   : > { %5356 = vmatpush3.msra.mxu0 %v2208_v10 }
 0xd1e   : > { %v2283_v60 = vpop.f32.mrb[22].mxu0  ;;  %5659 = vmatprep.subr.bf16.mxu0 %v5894_v3 }
 0xd1f   : > { %v2287_v61 = vmul.f32 0.35355338, %v2283_v60  ;;  %v5354_v62 = vpop.f32.mrb[23].mxu0  ;;  %v4890_v60 = vld [vmem:[%s6848_s6 + $0x108] sm:$0xff] }
 0xd20   : > { %v5672_v62 = vpack.c.bf16 %v4890_v60, %v4889_v59 }
 0xd21   : > { %v2288_v63 = vadd.f32 %v2287_v61, %v6106_v36  ;;  %v4891_v61 = vld [vmem:[%s6848_s6 + $0x110] sm:$0xff] }
 0xd23   : > { %v2289_v0 = vsel %vm744_vm2, %v2288_v63, -inf }
 0xd24   : > { %2290 = vmax.xlane.f32.xlu0 %v2289_v0 }
 0xdb1   : > { %v2291_v1 = vpop.xlane.xlu0 %2290 }
 0xdb2   : > { %v2292_v2 = vsub.f32 %v2288_v63, %v2291_v1  ;;  %v4892_v63 = vld [vmem:[%s6848_s6 + $0x118] sm:$0xff] }
 0xdb3   : > { %v5675_v0 = vpack.c.bf16 %v4892_v63, %v4891_v61 }
 0xdb4   : > { %v2293_v4 = vmul.f32 1.442695, %v2292_v2 }
 0xdb6   : > { %5804 = vpow2.f32 %v2293_v4 }
 0xdc0   : > { %v5805_v5 = vpop.eup %5804 }
 0xdc1   : > { %v2295_v6 = vsel %vm744_vm2, %v5805_v5, 0.0 }
 0xdc2   : > { %2296 = vadd.xlane.f32.xlu1 %v2295_v6 }
 0xe4f   : > { %v2297_v13 = vpop.xlane.xlu1 %2296 }
 0xe50   : > { %5806 = vrcp.f32 %v2297_v13  ;;  %v4894_v13 = vld [vmem:[%s6849_s7 + $0x8] ss:$0 sm:$0xff] }
 0xe5a   : > { %v5807_v14 = vpop.eup %5806 }
 0xe5b   : > { %v2299_v15 = vmul.f32 %v5807_v14, %v5805_v5 }
 0xe5d   : > { %5358 = vmatmul.mubr.msk.f32.vlgmr.msra.gmra.mrb[24].mxu0 %vm744_vm2, %v2299_v15 }
 0xe5e   : > { %5373 = vmatprep.mubr.msk.f32.mxu0 %vm5895_vm0, %v5896_v11  ;;  %5661 = vmatpush3.bf16.msra.mxu0 %v5660_v34 }
 0xe5f   : > { %5662 = vmatprep.subr.bf16.mxu0 %v5894_v3 }
 0xe62   : > { %5664 = vmatpush3.bf16.msra.mxu0 %v5663_v41  ;;  %v4913_v41 = vld [vmem:[%s6849_s7 + $0x5] ss:$0 sm:$0xff] }
 0xe63   : > { %5671 = vmatprep.subr.bf16.mxu0 %v5894_v3 }
 0xf30   : > { %v2369_v17 = vpop.f32.mrb[24].mxu0 }
 0xf31   : > { %v5359_v18 = vpop.f32.mrb[25].mxu0  ;;  %5363 = vmatmul.mubr.msk.f32.vlgmr.msra.gmra.mrb[20].mxu1 %vm744_vm2, %v2369_v17 }
 0xf32   : > { %5384 = vmatprep.mubr.msk.f32.mxu1 %vm5895_vm0, %v5896_v11  ;;  %v2893_v18 = vld [vmem:[%s6850_s8] sm:$0xff] }
0x1004   : > { %v2444_v19 = vpop.f32.mrb[20].mxu1 }
0x1005   : > { %v2448_v20 = vadd.f32 %v2444_v19, %v1961_v46  ;;  %v5364_v21 = vpop.f32.mrb[21].mxu1  ;;  %v4878_v46 = vld [vmem:[%s6853_s11] ss:$0 sm:$0xff] }
0x1006   : > { %v4902_v21 = vld [vmem:[%s6848_s6 + $0x28] sm:$0xff] }
0x1007   : > { %v2449_v22 = vadd.f32 %v2448_v20, %v6063_v16  ;;  %v5666_v16 = vpack.c.bf16 %v4883_v30, %v4882_v29  ;;  %v4901_v20 = vld [vmem:[%s6848_s6 + $0x20] sm:$0xff]  ;;  %v4909_v29 = vld [vmem:[%s6848_s6 + $0xa8] sm:$0xff] }
0x1009   : > { %v2450_v23 = vsel %vm504_vm1, %v2449_v22, 0.0  ;;  %5667 = vmatpush3.bf16.msra.mxu1 %v5666_v16  ;;  %v4910_v16 = vld [vmem:[%s6848_s6 + $0xb0] sm:$0xff] }
0x100a   : > { %2451 = vadd.xlane.f32.xlu0 %v2450_v23  ;;  %5668 = vmatprep.subr.bf16.mxu1 %v5894_v3  ;;  %v5678_v23 = vpack.c.bf16 %v4902_v21, %v4901_v20  ;;  %v5687_v34 = vpack.c.bf16 %v4911_v31, %v4910_v16  ;;  %v4936_v20 = vld [vmem:[%s6848_s6 + $0xd0] sm:$0xff]  ;;  %v4937_v21 = vld [vmem:[%s6848_s6 + $0xd8] sm:$0xff]  ;;  %v4939_v31 = vld [vmem:[%s6849_s7 + $0x6] ss:$0 sm:$0xff] }
0x100d   : > { %5670 = vmatpush3.bf16.msra.mxu1 %v5669_v37 }
0x100e   : > { %5398 = vmatprep.subr.mxu1 %v5896_v11 }
0x1010   : > { %5385 = vmatmul.mubr.msk.f32.vlgmr.msra.gmra.mrb[22].mxu1 %vm504_vm1, %v6409_v40 }
0x1011   : > { %5400 = vmatprep.mubr.msk.f32.mxu1 %vm5895_vm0, %v5896_v11 }
0x1097   : > { %v2452_v24 = vpop.xlane.xlu0 %2451 }
0x1098   : > { %v2454_v25 = vmul.f32 0.03125, %v2452_v24 }
0x109a   : > { %v2455_v26 = vsub.f32 %v2449_v22, %v2454_v25  ;;  %v4903_v25 = vld [vmem:[%s6848_s6 + $0x30] sm:$0xff] }
0x109c   : > { %v2456_v27 = vmul.f32 %v2455_v26, %v2455_v26 }
0x109e   : > { %v2457_v28 = vsel %vm504_vm1, %v2456_v27, 0.0 }
0x109f   : > { %2458 = vadd.xlane.f32.xlu1 %v2457_v28  ;;  %v4908_v28 = vld [vmem:[%s6848_s6 + $0xa0] sm:$0xff] }
0x10a0   : > { %v5684_v30 = vpack.c.bf16 %v4909_v29, %v4908_v28 }
0x10e3   : > { %v2644_v52 = vpop.f32.mrb[22].mxu1 }
0x10e4   : > { %v2645_v53 = vadd.f32 %v4887_v51, %v2644_v52  ;;  %v5386_v54 = vpop.f32.mrb[23].mxu1  ;;  %v4918_v52 = vld [vmem:[%s6848_s6 + $0x138] sm:$0xff] }
0x10e6   : > { %5399 = vmatpush3.xpose.msk.msra.mxu1 %vm744_vm2, %v2645_v53 }
0x10e7   : > { %5403 = vmatprep.subr.mxu1 %v5896_v11 }
0x112c   : > { %v2459_v42 = vpop.xlane.xlu1 %2458 }
0x112d   : > { %v2460_v43 = vmul.f32 0.03125, %v2459_v42 }
0x112f   : > { %v2461_v44 = vadd.f32 1e-05, %v2460_v43  ;;  %v4906_v43 = vld [vmem:[%s6849_s7 + $0x1] ss:$0 sm:$0xff] }
0x1131   : > { %5808 = vrsqrt.f32 %v2461_v44 }
0x113b   : > { %v5809_v45 = vpop.eup %5808 }
0x113c   : > { %v2463_v47 = vmul.f32 %v5809_v45, %v2455_v26  ;;  %v4904_v26 = vld [vmem:[%s6848_s6 + $0x38] sm:$0xff] }
0x113d   : > { %v5681_v27 = vpack.c.bf16 %v4904_v26, %v4903_v25 }
0x113e   : > { %v2470_v49 = vmul.f32 %v4878_v46, %v2463_v47  ;;  %v4915_v47 = vld [vmem:[%s6848_s6 + $0x120] sm:$0xff] }
0x1140   : > { %v6423_v50 = vadd.f32 %v4879_v48, %v2470_v49  ;;  %v4916_v48 = vld [vmem:[%s6848_s6 + $0x128] sm:$0xff]  ;;  %v4917_v49 = vld [vmem:[%s6848_s6 + $0x130] sm:$0xff] }
0x1141   : > { %v5690_v51 = vpack.c.bf16 %v4916_v48, %v4915_v47  ;;  %v5693_v53 = vpack.c.bf16 %v4918_v52, %v4917_v49 }
0x1142   : > { %5374 = vmatmul.mubr.msk.f32.vlgmr.msra.gmra.mrb[26].mxu0 %vm504_vm1, %v6423_v50 }
0x1143   : > { %5395 = vmatprep.mubr.msk.f32.mxu0 %vm5895_vm0, %v5896_v11  ;;  %5673 = vmatpush3.bf16.msra.mxu0 %v5672_v62 }
0x1144   : > { %5674 = vmatprep.subr.bf16.mxu0 %v5894_v3 }
0x1147   : > { %5676 = vmatpush3.bf16.msra.mxu0 %v5675_v0  ;;  %v4920_v0 = vld [vmem:[%s6849_s7 + $0x9] ss:$0 sm:$0xff] }
0x1148   : > { %5408 = vmatprep.subr.mxu0 %v5896_v11 }
0x114a   : > { %5396 = vmatmul.mubr.msk.f32.vlgmr.msra.gmra.mrb[28].mxu0 %vm504_vm1, %v6409_v40 }
0x114b   : > { %5410 = vmatprep.mubr.msk.f32.mxu0 %vm5895_vm0, %v5896_v11  ;;  %5409 = vmatpush3.msra.mxu0 %v2893_v18  ;;  %v4935_v18 = vld [vmem:[%s6848_s6 + $0xc8] sm:$0xff] }
0x114c   : > { %5683 = vmatprep.subr.bf16.mxu0 %v5894_v3 }
0x1215   : > { %v2558_v56 = vpop.f32.mrb[26].mxu0 }
0x1216   : > { %v2559_v57 = vadd.f32 %v4880_v55, %v2558_v56  ;;  %v5375_v58 = vpop.f32.mrb[27].mxu0 }
0x1218   : > { %5401 = vmatmul.mubr.msk.f32.vlgmr.msra.gmra.mrb[24].mxu1 %vm744_vm2, %v2559_v57 }
0x1219   : > { %5405 = vmatprep.mubr.msk.f32.mxu1 %vm5895_vm0, %v5896_v11 }
0x121d   : > { %v2727_v14 = vpop.f32.mrb[28].mxu0 }
0x121e   : > { %v2728_v15 = vadd.f32 %v4894_v13, %v2727_v14  ;;  %v5397_v17 = vpop.f32.mrb[29].mxu0  ;;  %v4929_v13 = vld [vmem:[%s6848_s6 + $0x50] sm:$0xff]  ;;  %v4930_v14 = vld [vmem:[%s6848_s6 + $0x58] sm:$0xff] }
0x121f   : > { %v4934_v17 = vld [vmem:[%s6848_s6 + $0xc0] sm:$0xff] }
0x1220   : > { %5404 = vmatpush3.msra.mxu1 %v2728_v15  ;;  %v5699_v15 = vpack.c.bf16 %v4930_v14, %v4929_v13 }
0x1221   : > { %5677 = vmatprep.subr.bf16.mxu1 %v5894_v3 }
0x12eb   : > { %v2803_v1 = vpop.f32.mrb[24].mxu1 }
0x12ec   : > { %v2807_v2 = vmul.f32 0.35355338, %v2803_v1  ;;  %v5402_v4 = vpop.f32.mrb[25].mxu1 }
0x12ee   : > { %v2808_v5 = vadd.f32 %v2807_v2, %v6106_v36 }
0x12f0   : > { %v2809_v6 = vsel %vm744_vm2, %v2808_v5, -inf }
0x12f1   : > { %2810 = vmax.xlane.f32.xlu0 %v2809_v6 }
0x137e   : > { %v2811_v7 = vpop.xlane.xlu0 %2810 }
0x137f   : > { %v2812_v8 = vsub.f32 %v2808_v5, %v2811_v7  ;;  %v4925_v5 = vld [vmem:[%s6850_s8 + $0x8] sm:$0xff]  ;;  %v4927_v7 = vld [vmem:[%s6848_s6 + $0x40] sm:$0xff] }
0x1381   : > { %v2813_v9 = vmul.f32 1.442695, %v2812_v8  ;;  %v4928_v8 = vld [vmem:[%s6848_s6 + $0x48] sm:$0xff] }
0x1383   : > { %5810 = vpow2.f32 %v2813_v9 }
0x138d   : > { %v5811_v10 = vpop.eup %5810 }
0x138e   : > { %v2815_v12 = vsel %vm744_vm2, %v5811_v10, 0.0 }
0x138f   : > { %2816 = vadd.xlane.f32.xlu1 %v2815_v12 }
0x141c   : > { %v2817_v19 = vpop.xlane.xlu1 %2816 }
0x141d   : > { %5812 = vrcp.f32 %v2817_v19  ;;  %v5702_v19 = vpack.c.bf16 %v4935_v18, %v4934_v17 }
0x1427   : > { %v5813_v22 = vpop.eup %5812 }
0x1428   : > { %v2819_v24 = vmul.f32 %v5813_v22, %v5811_v10  ;;  %v5696_v10 = vpack.c.bf16 %v4928_v8, %v4927_v7  ;;  %v4960_v7 = vld [vmem:[%s6848_s6 + $0xe0] sm:$0xff]  ;;  %v4961_v8 = vld [vmem:[%s6848_s6 + $0xe8] sm:$0xff] }
0x142a   : > { %5406 = vmatmul.mubr.msk.f32.vlgmr.msra.gmra.mrb[26].mxu1 %vm744_vm2, %v2819_v24  ;;  %v5705_v24 = vpack.c.bf16 %v4937_v21, %v4936_v20 }
0x142b   : > { %5679 = vmatpush3.bf16.msra.mxu1 %v5678_v23  ;;  %5421 = vmatprep.mubr.msk.f32.mxu1 %vm5895_vm0, %v5896_v11 }
0x142c   : > { %5680 = vmatprep.subr.bf16.mxu1 %v5894_v3 }
0x142f   : > { %5682 = vmatpush3.bf16.msra.mxu1 %v5681_v27  ;;  %v4900_v27 = vld [vmem:[%s6853_s11 + $0x5] ss:$0 sm:$0xff] }
0x1430   : > { %5689 = vmatprep.subr.bf16.mxu1 %v5894_v3 }
0x1432   : > { %5422 = vmatmul.mubr.msk.f32.vlgmr.msra.gmra.mrb[28].mxu1 %vm504_vm1, %v6423_v50 }
0x1433   : > { %5443 = vmatprep.mubr.msk.f32.mxu1 %vm5895_vm0, %v5896_v11  ;;  %5691 = vmatpush3.bf16.msra.mxu1 %v5690_v51 }
0x1434   : > { %5692 = vmatprep.subr.bf16.mxu1 %v5894_v3 }
0x1437   : > { %5694 = vmatpush3.bf16.msra.mxu1 %v5693_v53 }
0x1438   : > { %5456 = vmatprep.subr.mxu1 %v5896_v11 }
0x143a   : > { %5444 = vmatmul.mubr.msk.f32.vlgmr.msra.gmra.mrb[30].mxu1 %vm504_vm1, %v6409_v40 }
0x143b   : > { %5458 = vmatprep.mubr.msk.f32.mxu1 %vm5895_vm0, %v5896_v11  ;;  %5457 = vmatpush3.msra.mxu1 %v4925_v5  ;;  %v4956_v5 = vld [vmem:[%s6848_s6 + $0x78] sm:$0xff] }
0x143c   : > { %5701 = vmatprep.subr.bf16.mxu1 %v5894_v3 }
0x14fd   : > { %v2889_v32 = vpop.f32.mrb[26].mxu1 }
0x14fe   : > { %v5407_v33 = vpop.f32.mrb[27].mxu1  ;;  %5411 = vmatmul.mubr.msk.f32.vlgmr.msra.gmra.mrb[30].mxu0 %vm744_vm2, %v2889_v32 }
0x14ff   : > { %5685 = vmatpush3.bf16.msra.mxu0 %v5684_v30  ;;  %5432 = vmatprep.mubr.msk.f32.mxu0 %vm5895_vm0, %v5896_v11  ;;  %v4932_v33 = vld [vmem:[%s6849_s7 + $0x2] ss:$0 sm:$0xff] }
0x1500   : > { %5686 = vmatprep.subr.bf16.mxu0 %v5894_v3 }
0x1503   : > { %5688 = vmatpush3.bf16.msra.mxu0 %v5687_v34 }
0x1504   : > { %5446 = vmatprep.subr.mxu0 %v5896_v11 }
0x1505   : > { %v3053_v35 = vpop.f32.mrb[28].mxu1 }
0x1506   : > { %v5423_v37 = vpop.f32.mrb[29].mxu1  ;;  %5433 = vmatmul.mubr.msk.f32.vlgmr.msra.gmra.mrb[32].mxu0 %vm504_vm1, %v6409_v40  ;;  %v3054_v46 = vadd.f32 %v4906_v43, %v3053_v35  ;;  %v4944_v43 = vld [vmem:[%s6848_s6 + $0x158] sm:$0xff] }
0x1507   : > { %5448 = vmatprep.mubr.msk.f32.mxu0 %vm5895_vm0, %v5896_v11 }
0x150d   : > { %v3219_v1 = vpop.f32.mrb[30].mxu1 }
0x150e   : > { %v3220_v2 = vadd.f32 %v4920_v0, %v3219_v1  ;;  %v5445_v4 = vpop.f32.mrb[31].mxu1 }
0x150f   : > { %v4955_v4 = vld [vmem:[%s6848_s6 + $0x70] sm:$0xff] }
0x15d1   : > { %v6511_v38 = vpop.f32.mrb[30].mxu0 }
0x15d2   : > { %v5412_v39 = vpop.f32.mrb[31].mxu0  ;;  %v2973_v28 = vadd.f32 %v4900_v27, %v6511_v38  ;;  %v4941_v38 = vld [vmem:[%s6848_s6 + $0x140] sm:$0xff] }
0x15d3   : > { %v4942_v39 = vld [vmem:[%s6848_s6 + $0x148] sm:$0xff] }
0x15d9   : > { %v3136_v42 = vpop.f32.mrb[32].mxu0 }
0x15da   : > { %v3137_v44 = vadd.f32 %v4913_v41, %v3136_v42  ;;  %v5434_v45 = vpop.f32.mrb[33].mxu0  ;;  %v4943_v41 = vld [vmem:[%s6848_s6 + $0x150] sm:$0xff]  ;;  %v5708_v42 = vpack.c.bf16 %v4942_v39, %v4941_v38 }
0x15dc   : > { %5447 = vmatpush3.xpose.msk.msra.mxu0 %vm744_vm2, %v3137_v44  ;;  %v5711_v44 = vpack.c.bf16 %v4944_v43, %v4943_v41 }
0x15dd   : > { %5451 = vmatprep.subr.mxu0 %v5896_v11 }
0x15df   : > { %5449 = vmatmul.mubr.msk.f32.vlgmr.msra.gmra.mrb[34].mxu0 %vm744_vm2, %v3054_v46 }
0x15e0   : > { %5453 = vmatprep.mubr.msk.f32.mxu0 %vm5895_vm0, %v5896_v11  ;;  %5452 = vmatpush3.msra.mxu0 %v3220_v2 }
0x15e1   : > { %5695 = vmatprep.subr.bf16.mxu0 %v5894_v3 }
0x16b2   : > { %v3295_v54 = vpop.f32.mrb[34].mxu0 }
0x16b3   : > { %v3299_v55 = vmul.f32 0.35355338, %v3295_v54  ;;  %v5450_v56 = vpop.f32.mrb[35].mxu0 }
0x16b4   : > { %v4946_v56 = vld [vmem:[%s6849_s7 + $0xa] ss:$0 sm:$0xff] }
0x16b5   : > { %v3300_v57 = vadd.f32 %v3299_v55, %v6106_v36 }
0x16b7   : > { %v3301_v58 = vsel %vm744_vm2, %v3300_v57, -inf }
0x16b8   : > { %3302 = vmax.xlane.f32.xlu0 %v3301_v58 }
0x1745   : > { %v3303_v59 = vpop.xlane.xlu0 %3302 }
0x1746   : > { %v3304_v60 = vsub.f32 %v3300_v57, %v3303_v59 }
0x1748   : > { %v3305_v61 = vmul.f32 1.442695, %v3304_v60  ;;  %v4951_v60 = vld [vmem:[%s6850_s8 + $0x10] sm:$0xff] }
0x174a   : > { %5814 = vpow2.f32 %v3305_v61 }
0x1754   : > { %v5815_v62 = vpop.eup %5814 }
0x1755   : > { %v3307_v63 = vsel %vm744_vm2, %v5815_v62, 0.0 }
0x1756   : > { %3308 = vadd.xlane.f32.xlu1 %v3307_v63  ;;  %v4954_v63 = vld [vmem:[%s6848_s6 + $0x68] sm:$0xff] }
0x17e3   : > { %v3309_v6 = vpop.xlane.xlu1 %3308 }
0x17e4   : > { %5816 = vrcp.f32 %v3309_v6  ;;  %v5717_v6 = vpack.c.bf16 %v4956_v5, %v4955_v4  ;;  %v4561_v5 = vld [vmem:[%s6852_s10] sm:$0xff] }
0x17ee   : > { %v5817_v9 = vpop.eup %5816 }
0x17ef   : > { %v3311_v12 = vmul.f32 %v5817_v9, %v5815_v62  ;;  %v4953_v62 = vld [vmem:[%s6848_s6 + $0x60] sm:$0xff]  ;;  %v5720_v9 = vpack.c.bf16 %v4961_v8, %v4960_v7  ;;  %v4563_v7 = vld [vmem:[%s6852_s10 + $0x10] sm:$0xff] }
0x17f0   : > { %v5714_v1 = vpack.c.bf16 %v4954_v63, %v4953_v62 }
0x17f1   : > { %5454 = vmatmul.mubr.msk.f32.vlgmr.msra.gmra.mrb[36].mxu0 %vm744_vm2, %v3311_v12  ;;  %v4963_v12 = vld [vmem:[%s6848_s6 + $0xf8] sm:$0xff] }
0x17f2   : > { %5697 = vmatpush3.bf16.msra.mxu0 %v5696_v10  ;;  %5469 = vmatprep.mubr.msk.f32.mxu0 %vm5895_vm0, %v5896_v11  ;;  %v4962_v10 = vld [vmem:[%s6848_s6 + $0xf0] sm:$0xff] }
0x17f3   : > { %5698 = vmatprep.subr.bf16.mxu0 %v5894_v3 }
0x17f6   : > { %5700 = vmatpush3.bf16.msra.mxu0 %v5699_v15  ;;  %v5723_v15 = vpack.c.bf16 %v4963_v12, %v4962_v10 }
0x17f7   : > { %5707 = vmatprep.subr.bf16.mxu0 %v5894_v3 }
0x17f9   : > { %5470 = vmatmul.mubr.msk.f32.vlgmr.msra.gmra.mrb[38].mxu0 %vm504_vm1, %v6423_v50 }
0x17fa   : > { %5491 = vmatprep.mubr.msk.f32.mxu0 %vm5895_vm0, %v5896_v11  ;;  %5709 = vmatpush3.bf16.msra.mxu0 %v5708_v42 }
0x17fb   : > { %5710 = vmatprep.subr.bf16.mxu0 %v5894_v3 }
0x17fe   : > { %5712 = vmatpush3.bf16.msra.mxu0 %v5711_v44 }
0x17ff   : > { %5504 = vmatprep.subr.mxu0 %v5896_v11 }
0x1801   : > { %5492 = vmatmul.mubr.msk.f32.vlgmr.msra.gmra.mrb[40].mxu0 %vm504_vm1, %v6409_v40 }
0x1802   : > { %5506 = vmatprep.mubr.msk.f32.mxu0 %vm5895_vm0, %v5896_v11  ;;  %5505 = vmatpush3.msra.mxu0 %v4951_v60 }
0x1803   : > { %5719 = vmatprep.subr.bf16.mxu0 %v5894_v3 }
0x18c4   : > { %v3381_v22 = vpop.f32.mrb[36].mxu0 }
0x18c5   : > { %v5455_v23 = vpop.f32.mrb[37].mxu0  ;;  %5459 = vmatmul.mubr.msk.f32.vlgmr.msra.gmra.mrb[32].mxu1 %vm744_vm2, %v3381_v22  ;;  %v4965_v22 = vld [vmem:[%s6849_s7 + $0x7] ss:$0 sm:$0xff] }
0x18c6   : > { %5703 = vmatpush3.bf16.msra.mxu1 %v5702_v19  ;;  %5480 = vmatprep.mubr.msk.f32.mxu1 %vm5895_vm0, %v5896_v11 }
0x18c7   : > { %5704 = vmatprep.subr.bf16.mxu1 %v5894_v3 }
0x18ca   : > { %5706 = vmatpush3.bf16.msra.mxu1 %v5705_v24  ;;  %v4958_v24 = vld [vmem:[%s6849_s7 + $0x3] ss:$0 sm:$0xff] }
0x18cb   : > { %5494 = vmatprep.subr.mxu1 %v5896_v11 }
0x18cc   : > { %v3540_v25 = vpop.f32.mrb[38].mxu0 }
0x18cd   : > { %v5471_v26 = vpop.f32.mrb[39].mxu0  ;;  %5481 = vmatmul.mubr.msk.f32.vlgmr.msra.gmra.mrb[34].mxu1 %vm504_vm1, %v6409_v40  ;;  %v3541_v37 = vadd.f32 %v4932_v33, %v3540_v25 }
0x18ce   : > { %5496 = vmatprep.mubr.msk.f32.mxu1 %vm5895_vm0, %v5896_v11 }
0x18d4   : > { %v3706_v57 = vpop.f32.mrb[40].mxu0 }
0x18d5   : > { %v3707_v58 = vadd.f32 %v4946_v56, %v3706_v57  ;;  %v5493_v59 = vpop.f32.mrb[41].mxu0 }
0x1998   : > { %v3456_v29 = vpop.f32.mrb[32].mxu1 }
0x1999   : > { %v6599_v30 = vadd.f32 %v3456_v29, %v2973_v28  ;;  %v5460_v16 = vpop.f32.mrb[33].mxu1  ;;  %v4967_v28 = vld [vmem:[%s6848_s6 + $0x160] sm:$0xff]  ;;  %v4968_v29 = vld [vmem:[%s6848_s6 + $0x168] sm:$0xff] }
0x199a   : > { %v5726_v16 = vpack.c.bf16 %v4968_v29, %v4967_v28  ;;  %v4981_v28 = vld [vmem:[%s6854_s12] ss:$0 sm:$0xff]  ;;  %v4983_v29 = vld [vmem:[%s6854_s12 + $0x1] ss:$0 sm:$0xff] }
0x19a0   : > { %v3623_v32 = vpop.f32.mrb[34].mxu1 }
0x19a1   : > { %v3624_v34 = vadd.f32 %v4939_v31, %v3623_v32  ;;  %v5482_v35 = vpop.f32.mrb[35].mxu1  ;;  %v4970_v31 = vld [vmem:[%s6848_s6 + $0x178] sm:$0xff] }
0x19a3   : > { %5495 = vmatpush3.xpose.msk.msra.mxu1 %vm744_vm2, %v3624_v34 }
0x19a4   : > { %5499 = vmatprep.subr.mxu1 %v5896_v11 }
0x19a6   : > { %5497 = vmatmul.mubr.msk.f32.vlgmr.msra.gmra.mrb[36].mxu1 %vm744_vm2, %v3541_v37 }
0x19a7   : > { %5501 = vmatprep.mubr.msk.f32.mxu1 %vm5895_vm0, %v5896_v11  ;;  %5500 = vmatpush3.msra.mxu1 %v3707_v58 }
0x19a8   : > { %5713 = vmatprep.subr.bf16.mxu1 %v5894_v3 }
0x1a79   : > { %v3782_v45 = vpop.f32.mrb[36].mxu1 }
0x1a7a   : > { %v3786_v46 = vmul.f32 0.35355338, %v3782_v45  ;;  %v5498_v47 = vpop.f32.mrb[37].mxu1  ;;  %v4972_v45 = vld [vmem:[%s6849_s7 + $0xb] ss:$0 sm:$0xff] }
0x1a7c   : > { %v3787_v48 = vadd.f32 %v3786_v46, %v6106_v36 }
0x1a7e   : > { %v3788_v49 = vsel %vm744_vm2, %v3787_v48, -inf }
0x1a7f   : > { %3789 = vmax.xlane.f32.xlu0 %v3788_v49 }
0x1b0c   : > { %v3790_v51 = vpop.xlane.xlu0 %3789 }
0x1b0d   : > { %v3791_v52 = vsub.f32 %v3787_v48, %v3790_v51 }
0x1b0f   : > { %v3792_v53 = vmul.f32 1.442695, %v3791_v52 }
0x1b11   : > { %5818 = vpow2.f32 %v3792_v53 }
0x1b1b   : > { %v5819_v54 = vpop.eup %5818 }
0x1b1c   : > { %v3794_v55 = vsel %vm744_vm2, %v5819_v54, 0.0 }
0x1b1d   : > { %3795 = vadd.xlane.f32.xlu1 %v3794_v55 }
0x1baa   : > { %v3796_v61 = vpop.xlane.xlu1 %3795 }
0x1bab   : > { %5820 = vrcp.f32 %v3796_v61 }
0x1bb5   : > { %v5821_v0 = vpop.eup %5820 }
0x1bb6   : > { %v3798_v2 = vmul.f32 %v5821_v0, %v5819_v54  ;;  %v4463_v0 = vld [vmem:[%s6851_s9] sm:$0xff] }
0x1bb8   : > { %5502 = vmatmul.mubr.msk.f32.vlgmr.msra.gmra.mrb[38].mxu1 %vm744_vm2, %v3798_v2  ;;  %v4466_v2 = vld [vmem:[%s6851_s9 + $0x18] sm:$0xff] }
0x1bb9   : > { %5715 = vmatpush3.bf16.msra.mxu1 %v5714_v1  ;;  %5517 = vmatprep.mubr.msk.f32.mxu1 %vm5895_vm0, %v5896_v11 }
0x1bba   : > { %5716 = vmatprep.subr.bf16.mxu1 %v5894_v3 }
0x1bbd   : > { %5718 = vmatpush3.bf16.msra.mxu1 %v5717_v6  ;;  %v4562_v6 = vld [vmem:[%s6852_s10 + $0x8] sm:$0xff] }
0x1bbe   : > { %5725 = vmatprep.subr.bf16.mxu1 %v5894_v3  ;;  %v5738_v8 = vpack.c.bf16 %v4562_v6, %v4561_v5 }
0x1bc0   : > { %5518 = vmatmul.mubr.msk.f32.vlgmr.msra.gmra.mrb[40].mxu1 %vm504_vm1, %v6423_v50 }
0x1bc1   : > { %5539 = vmatprep.mubr.msk.f32.mxu1 %vm5895_vm0, %v5896_v11  ;;  %5727 = vmatpush3.bf16.msra.mxu1 %v5726_v16 }
0x1bc2   : > { %5728 = vmatprep.subr.bf16.mxu1 %v5894_v3 }
0x1c8b   : > { %v3868_v13 = vpop.f32.mrb[38].mxu1 }
0x1c8c   : > { %v5503_v14 = vpop.f32.mrb[39].mxu1  ;;  %5507 = vmatmul.mubr.msk.f32.vlgmr.msra.gmra.mrb[42].mxu0 %vm744_vm2, %v3868_v13 }
0x1c8d   : > { %5721 = vmatpush3.bf16.msra.mxu0 %v5720_v9  ;;  %5528 = vmatprep.mubr.msk.f32.mxu0 %vm5895_vm0, %v5896_v11  ;;  %v4564_v9 = vld [vmem:[%s6852_s10 + $0x18] sm:$0xff] }
0x1c8e   : > { %5722 = vmatprep.subr.bf16.mxu0 %v5894_v3  ;;  %v5741_v10 = vpack.c.bf16 %v4564_v9, %v4563_v7 }
0x1c91   : > { %5724 = vmatpush3.bf16.msra.mxu0 %v5723_v15 }
0x1c92   : > { %5542 = vmatprep.subr.mxu0 %v5896_v11 }
0x1c93   : > { %v4027_v17 = vpop.f32.mrb[40].mxu1 }
0x1c94   : > { %v5519_v18 = vpop.f32.mrb[41].mxu1  ;;  %5529 = vmatmul.mubr.msk.f32.vlgmr.msra.gmra.mrb[44].mxu0 %vm504_vm1, %v6409_v40  ;;  %v4028_v27 = vadd.f32 %v4958_v24, %v4027_v17  ;;  %v4979_v17 = vld [vmem:[%s6853_s11 + $0x2] ss:$0 sm:$0xff] }
0x1c95   : > { %5544 = vmatprep.mubr.msk.f32.mxu0 %vm5895_vm0, %v5896_v11 }
0x1d5f   : > { %v3943_v19 = vpop.f32.mrb[42].mxu0 }
0x1d60   : > { %v3947_v20 = vadd.f32 %v3943_v19, %v6599_v30  ;;  %v5508_v21 = vpop.f32.mrb[43].mxu0  ;;  %v4969_v30 = vld [vmem:[%s6848_s6 + $0x170] sm:$0xff]  ;;  %v4980_v19 = vld [vmem:[%s6853_s11 + $0x3] ss:$0 sm:$0xff] }
0x1d61   : > { %v5729_v32 = vpack.c.bf16 %v4970_v31, %v4969_v30  ;;  %v4984_v31 = vld [vmem:[%s6854_s12 + $0x2] ss:$0 sm:$0xff] }
0x1d63   : > { %5730 = vmatpush3.bf16.msra.mxu1 %v5729_v32 }
0x1d64   : > { %5552 = vmatprep.subr.mxu1 %v5896_v11 }
0x1d66   : > { %5540 = vmatmul.mubr.msk.f32.vlgmr.msra.gmra.mrb[42].mxu1 %vm504_vm1, %v6409_v40 }
0x1d67   : > { %v4110_v23 = vpop.f32.mrb[44].mxu0  ;;  %5554 = vmatprep.mubr.msk.f32.mxu1 %vm5895_vm0, %v5896_v11 }
0x1d68   : > { %v4111_v25 = vadd.f32 %v4965_v22, %v4110_v23  ;;  %v5530_v26 = vpop.f32.mrb[45].mxu0  ;;  %v4565_v22 = vld [vmem:[%s6852_s10 + $0x20] sm:$0xff]  ;;  %v4566_v23 = vld [vmem:[%s6852_s10 + $0x28] sm:$0xff] }
0x1d69   : > { %v5744_v24 = vpack.c.bf16 %v4566_v23, %v4565_v22  ;;  %v4568_v26 = vld [vmem:[%s6852_s10 + $0x38] sm:$0xff] }
0x1d6a   : > { %5543 = vmatpush3.xpose.msk.msra.mxu0 %vm744_vm2, %v4111_v25  ;;  %v4567_v25 = vld [vmem:[%s6852_s10 + $0x30] sm:$0xff] }
0x1d6b   : > { %5547 = vmatprep.subr.mxu0 %v5896_v11 }
0x1d6d   : > { %5545 = vmatmul.mubr.msk.f32.vlgmr.msra.gmra.mrb[46].mxu0 %vm744_vm2, %v4028_v27  ;;  %v5747_v27 = vpack.c.bf16 %v4568_v26, %v4567_v25 }
0x1d6e   : > { %5549 = vmatprep.mubr.msk.f32.mxu0 %vm5895_vm0, %v5896_v11 }
0x1e39   : > { %v4193_v40 = vpop.f32.mrb[42].mxu1 }
0x1e3a   : > { %v5541_v46 = vpop.f32.mrb[43].mxu1  ;;  %v4194_v47 = vadd.f32 %v4972_v45, %v4193_v40 }
0x1e3c   : > { %5548 = vmatpush3.msra.mxu0 %v4194_v47 }
0x1e3d   : > { %5731 = vmatprep.subr.bf16.mxu0 %v5894_v3 }
0x1e40   : > { %v4269_v33 = vpop.f32.mrb[46].mxu0 }
0x1e41   : > { %v4273_v34 = vmul.f32 0.35355338, %v4269_v33  ;;  %v5546_v35 = vpop.f32.mrb[47].mxu0 }
0x1e42   : > { %v4985_v35 = vld [vmem:[%s6853_s11 + $0x6] ss:$0 sm:$0xff] }
0x1e43   : > { %v4274_v37 = vadd.f32 %v4273_v34, %v6106_v36  ;;  %v4977_v36 = vld [vmem:[%s6850_s8 + $0x18] sm:$0xff] }
0x1e44   : > { %5553 = vmatpush3.msra.mxu1 %v4977_v36 }
0x1e45   : > { %v4275_v38 = vsel %vm744_vm2, %v4274_v37, -inf  ;;  %5737 = vmatprep.subr.bf16.mxu1 %v5894_v3 }
0x1e46   : > { %4276 = vmax.xlane.f32.xlu0 %v4275_v38 }
0x1ed3   : > { %v4277_v39 = vpop.xlane.xlu0 %4276 }
0x1ed4   : > { %v4278_v41 = vsub.f32 %v4274_v37, %v4277_v39 }
0x1ed6   : > { %v4279_v42 = vmul.f32 1.442695, %v4278_v41 }
0x1ed8   : > { %5822 = vpow2.f32 %v4279_v42 }
0x1ee2   : > { %v5823_v43 = vpop.eup %5822 }
0x1ee3   : > { %v4281_v44 = vsel %vm744_vm2, %v5823_v43, 0.0 }
0x1ee4   : > { %4282 = vadd.xlane.f32.xlu1 %v4281_v44 }
0x1f71   : > { %v4283_v48 = vpop.xlane.xlu1 %4282 }
0x1f72   : > { %5824 = vrcp.f32 %v4283_v48 }
0x1f7c   : > { %v5825_v49 = vpop.eup %5824 }
0x1f7d   : > { %v4285_v51 = vmul.f32 %v5825_v49, %v5823_v43 }
0x1f7f   : > { %5550 = vmatmul.mubr.msk.f32.vlgmr.msra.gmra.mrb[48].mxu0 %vm744_vm2, %v4285_v51 }
0x1f80   : > { %5565 = vmatprep.mubr.msk.f32.mxu0 %vm5895_vm0, %v5896_v11 }
0x2052   : > { %v4355_v52 = vpop.f32.mrb[48].mxu0 }
0x2053   : > { %v5551_v53 = vpop.f32.mrb[49].mxu0  ;;  %5555 = vmatmul.mubr.msk.f32.vlgmr.msra.gmra.mrb[44].mxu1 %vm744_vm2, %v4355_v52 }
0x2054   : > { %5584 = vmatprep.mubr.msk.f32.mxu1 %vm5895_vm0, %v5896_v11  ;;  %v4464_v11 = vld [vmem:[%s6851_s9 + $0x8] sm:$0xff]  ;;  %5739 = vmatpush3.bf16.msra.mxu1 %v5738_v8 }
0x2055   : > { %v5732_v1 = vpack.c.bf16 %v4464_v11, %v4463_v0  ;;  %5740 = vmatprep.subr.bf16.mxu1 %v5894_v3 }
0x2057   : > { %5733 = vmatpush3.bf16.msra.mxu0 %v5732_v1 }
0x2058   : > { %5734 = vmatprep.subr.bf16.mxu0 %v5894_v3  ;;  %5742 = vmatpush3.bf16.msra.mxu1 %v5741_v10 }
0x2059   : > { %5743 = vmatprep.subr.bf16.mxu1 %v5894_v3 }
0x205c   : > { %5745 = vmatpush3.bf16.msra.mxu1 %v5744_v24 }
0x205d   : > { %5746 = vmatprep.subr.bf16.mxu1 %v5894_v3 }
0x2060   : > { %5748 = vmatpush3.bf16.msra.mxu1 %v5747_v27 }
0x2126   : > { %v4430_v54 = vpop.f32.mrb[44].mxu1 }
0x2127   : > { %v4434_v55 = vadd.f32 %v4430_v54, %v3947_v20  ;;  %v5556_v56 = vpop.f32.mrb[45].mxu1 }
0x2129   : > { %v4435_v57 = vadd.f32 %v4434_v55, %v6423_v50  ;;  %v4465_v50 = vld [vmem:[%s6851_s9 + $0x10] sm:$0xff] }
0x212a   : > { %v5735_v4 = vpack.c.bf16 %v4466_v2, %v4465_v50 }
0x212b   : > { %v4436_v58 = vsel %vm504_vm1, %v4435_v57, 0.0 }
0x212c   : > { %4437 = vadd.xlane.f32.xlu0 %v4436_v58  ;;  %5736 = vmatpush3.bf16.msra.mxu0 %v5735_v4 }
0x21b9   : > { %v4438_v59 = vpop.xlane.xlu0 %4437 }
0x21ba   : > { %v4439_v60 = vmul.f32 0.03125, %v4438_v59 }
0x21bc   : > { %v4440_v61 = vsub.f32 %v4435_v57, %v4439_v60 }
0x21be   : > { %v4441_v62 = vmul.f32 %v4440_v61, %v4440_v61 }
0x21c0   : > { %v4442_v63 = vsel %vm504_vm1, %v4441_v62, 0.0 }
0x21c1   : > { %4443 = vadd.xlane.f32.xlu1 %v4442_v63 }
0x224e   : > { %v4444_v12 = vpop.xlane.xlu1 %4443 }
0x224f   : > { %v4445_v13 = vmul.f32 0.03125, %v4444_v12 }
0x2251   : > { %v4446_v14 = vadd.f32 1e-05, %v4445_v13 }
0x2253   : > { %5826 = vrsqrt.f32 %v4446_v14 }
0x225d   : > { %v5827_v15 = vpop.eup %5826 }
0x225e   : > { %v4448_v18 = vmul.f32 %v5827_v15, %v4440_v61 }
0x2260   : > { %v4455_v20 = vmul.f32 %v4979_v17, %v4448_v18 }
0x2262   : > { %v4462_v21 = vadd.f32 %v4980_v19, %v4455_v20 }
0x2264   : > { %5566 = vmatmul.mubr.msk.f32.vlgmr.msra.gmra.mrb[50].mxu0 %vm504_vm1, %v4462_v21 }
0x2337   : > { %v4542_v30 = vpop.f32.mrb[50].mxu0 }
0x2338   : > { %v4543_v3 = vadd.f32 %v4981_v28, %v4542_v30  ;;  %v5567_v16 = vpop.f32.mrb[51].mxu0 }
0x233a   : > { %v4552_v32 = vmul.f32 %v4983_v29, %v4543_v3 }
0x233c   : > { %v4559_v33 = vadd.f32 %v4984_v31, %v4552_v32 }
0x233e   : > { %v4560_v34 = vmax.f32 %v4559_v33, 0.0 }
0x2340   : > { %5585 = vmatmul.mubr.msk.f32.vlgmr.msra.gmra.mrb[46].mxu1 %vm4575_vm4, %v4560_v34 }
0x2413   : > { %v4645_v37 = vpop.f32.mrb[46].mxu1 }
0x2414   : > { %v4646_v38 = vadd.f32 %v4985_v35, %v4645_v37  ;;  %v5586_v39 = vpop.f32.mrb[47].mxu1 }
0x2416   : > { %v4649_v41 = vadd.f32 %v4646_v38, %v4462_v21 }
0x2418   : > { %v4650_v42 = vsel %vm504_vm1, %v4649_v41, 0.0 }
0x2419   : > { %4651 = vadd.xlane.f32.xlu0 %v4650_v42 }
0x24a6   : > { %v4652_v43 = vpop.xlane.xlu0 %4651 }
0x24a7   : > { %v4653_v44 = vmul.f32 0.03125, %v4652_v43 }
0x24a9   : > { %v4654_v40 = vsub.f32 %v4649_v41, %v4653_v44 }
0x24ab   : > { %v4655_v45 = vmul.f32 %v4654_v40, %v4654_v40 }
0x24ad   : > { %v4656_v46 = vsel %vm504_vm1, %v4655_v45, 0.0 }
0x24ae   : > { %4657 = vadd.xlane.f32.xlu1 %v4656_v46 }
0x253b   : > { %v4658_v47 = vpop.xlane.xlu1 %4657 }
0x253c   : > { %v4659_v36 = vmul.f32 0.03125, %v4658_v47 }
0x253e   : > { %v4660_v48 = vadd.f32 1e-05, %v4659_v36 }
0x2540   : > { %5828 = vrsqrt.f32 %v4660_v48 }
0x254a   : > { %v5829_v49 = vpop.eup %5828 }
0x254b   : > { %v4662_v51 = vmul.f32 %v5829_v49, %v4654_v40 }
0x254d   : > { %v4663_v52 = vmul.f32 %v4979_v17, %v4662_v51 }
0x254f   : > { %v4664_v53 = vadd.f32 %v4980_v19, %v4663_v52 }
0x2551   : > { %4665 = vst.msk [vmem:[%s457_s22] sm:$0xff] %vm504_vm1, %v4664_v53 }
0x2552   : > { %5843 = shalt.err (!%p5840_p3)
}
0x2553   : > { %s5844_s16 = scalar_lea.hbm %s6799_s15, 128  ;;  %s5848_s24 = scalar_lea.hbm %s6855_s13, 256 }
0x2554   : > { %p5845_p4 = scmp.ne.s32.totalorder %s6799_s15, %s5844_s16  ;;  %p5849_p9 = scmp.lt.u32.totalorder %s6799_s15, %s6855_s13 }
0x2555   : > { %p5850_p10 = scmp.lt.u32.totalorder %s5848_s24, %s5844_s16  ;;  %p5852_p12 = scmp.lt.u32.totalorder %s5844_s16, %s6799_s15 }
0x2556   : > { %p5846_p7 = pnand %p5845_p4, %p6007_p5 }
0x2557   : > { %p5851_p11 = por %p5850_p10, %p5849_p9 }
0x2558   : > { %p5847_p8 = pneg %p5846_p7 }
0x2559   : > { %p5853_p13 = por %p5852_p12, %p5851_p11 }
0x255b   : > { %p5854_p0 = pnand %p5853_p13, %p5847_p8 }
0x255d   : > { %5857 = shalt.err (!%p5854_p0)
}
0x255e   : > { %5749 = dma.vmem_to_hbm [thread:$0]  (%p6007_p5), %s6801_s23, 128, %s6799_s15, %s4667_s27  }
0x255f PF: > { %p5755_p1 = scmp.ge.s32.totalorder %s5892_s28, 2  ;;  %s4692_s0 = sand.u32 1, %s5880_s25  }
0x2560   : > { %s4693_s17 = scalar_lea.sflag [#allocation3], %s4692_s0 }
0x2561   : > { %p5752_p2 = pnand %p5755_p1, %p6011_p6 }
0x2563   : > { %5875 = dma.done.wait (!%p5752_p2), %s4693_s17, 128  }
0x2564   : > { %5877 = vsyncadd (!%p5752_p2), %s4693_s17, 4294967168  ;;  %s6863_s20 = sld [smem:[#allocation5_spill]]  ;;  %s6864_s27 = sld [smem:[#allocation6_spill]] }
0x2565   : > { %p23_p3 = scmp.ge.s32.totalorder %s5994_s14, 4   ;;  %s6865_s25 = smov %s5884_s26 }
0x2566   : > { %s6867_s28 = smov %s5994_s14 }
0x2567   :  { %25 = sbr.rel (!%p23_p3) target bundleno = 5 (0x5), region = 171 }
0x256a   : > { %s6866_s26 = smov %s6863_s20 }
0x256e   :  { %4698 = vsyncpa [#allocation3], 1 }
0x256f   :  { %4700 = vsyncpa [#allocation3 + $0x1], 1 }

</bundles_post_ra>
